<compile_context>
chip_gen: v7x
topology: tpu7x:2x2x1
jax: 0.10.0
libtpu: 0.0.40
codegen_flags: <defaults>
</compile_context>

<pallas_src>
import jax
import jax.numpy as jnp
from jax.experimental import pallas as pl
from jax.experimental.pallas import tpu as pltpu

BN_EPS = 1e-5
CONV_DTYPE = jnp.bfloat16       # MXU operand dtype (accumulation stays f32)

_VMEM_LIMIT = None


def _vmem_limit():
    """Generation-dependent VMEM limit: cap minus headroom (48 MiB on 64 MiB parts)."""
    global _VMEM_LIMIT
    if _VMEM_LIMIT is None:
        try:
            cap = int(pltpu.get_tpu_info().vmem_capacity_bytes)
        except Exception:
            cap = 64 * 1024 * 1024
        _VMEM_LIMIT = max(cap - 16 * 1024 * 1024, 32 * 1024 * 1024)
    return _VMEM_LIMIT


def _round_up(x, m):
    return ((x + m - 1) // m) * m


def _prefix_offsets(sizes):
    offs, acc = [], 0
    for s in sizes:
        offs.append(acc)
        acc += s
    return tuple(offs)


# --------------------------------------------------------------------------- #
# Kernel 1 (one-time, input group only): per-channel sum / sum-of-squares
# --------------------------------------------------------------------------- #
def _group_stats(x):
    """x: (N, C, HW) f32 -> per-channel (sum, sumsq), each (C,) f32."""
    n, c, hw = x.shape

    def kernel(x_ref, sum_ref, sq_ref):
        v = x_ref[0]                                          # (C, HW) f32
        sum_ref[0] = jnp.sum(v, axis=1, keepdims=True)
        sq_ref[0] = jnp.sum(v * v, axis=1, keepdims=True)

    s, q = pl.pallas_call(
        kernel,
        grid_spec=pltpu.PrefetchScalarGridSpec(
            num_scalar_prefetch=0,
            grid=(n,),
            in_specs=[pl.BlockSpec((1, c, hw), lambda i: (i, 0, 0))],
            out_specs=(pl.BlockSpec((1, c, 1), lambda i: (i, 0, 0)),
                       pl.BlockSpec((1, c, 1), lambda i: (i, 0, 0)))),
        out_shape=(jax.ShapeDtypeStruct((n, c, 1), jnp.float32),
                   jax.ShapeDtypeStruct((n, c, 1), jnp.float32)),
        compiler_params=pltpu.CompilerParams(
            dimension_semantics=("parallel",),
            vmem_limit_bytes=_vmem_limit()),
    )(x)
    return s.sum(axis=0).reshape(-1), q.sum(axis=0).reshape(-1)


# --------------------------------------------------------------------------- #
# Kernel 2 (per layer): fused BN-apply + ReLU + 3x3 conv + next-layer BN stats
# --------------------------------------------------------------------------- #
def _make_conv_kernel(offsets, sizes, g, h, w, ext):
    n_groups = len(sizes)
    hw = h * w

    def kernel(*refs):
        f_refs = refs[:n_groups]
        scale_ref = refs[n_groups]          # (Cin, 1) f32
        shift_ref = refs[n_groups + 1]      # (Cin, 1) f32
        w_ref = refs[n_groups + 2]          # (9*g, Cin) bf16, tap-major rows
        mask_ref = refs[n_groups + 3]       # (2, HW) f32 column-border masks
        o_ref = refs[n_groups + 4]          # (1, g, HW) f32
        sum_ref = refs[n_groups + 5]        # (1, g, 1) f32
        sq_ref = refs[n_groups + 6]         # (1, g, 1) f32
        y_sc = refs[n_groups + 7]           # (Cin, HW) bf16 scratch
        pe_sc = refs[n_groups + 8]          # (9*g, HW + 2*ext) f32 scratch

        # Fused BatchNorm-apply (precomputed scale/shift) + ReLU; f32 math,
        # single cast to bf16 on the store into the MXU operand slab.
        for j in range(n_groups):
            off, c = offsets[j], sizes[j]
            x = f_refs[j][0]                                  # (c, HW) f32
            yv = jnp.maximum(x * scale_ref[off:off + c, :]
                             + shift_ref[off:off + c, :], 0.0)
            y_sc[off:off + c, :] = yv.astype(CONV_DTYPE)

        # ONE stacked MXU matmul: (9*g, Cin) @ (Cin, HW) -> (9*g, HW) f32.
        p = jnp.dot(w_ref[...], y_sc[...], preferred_element_type=jnp.float32)

        # Zero row-boundary halos and store P at a 128-lane-aligned offset.
        zeros_halo = jnp.zeros((9 * g, ext), jnp.float32)
        pe_sc[:, 0:ext] = zeros_halo
        pe_sc[:, ext + hw:ext + hw + ext] = zeros_halo
        pe_sc[:, ext:ext + hw] = p

        # "Shift outputs, not inputs": the nine taps are shifted (g, HW) slices
        # of P (channel contraction commutes with the spatial shift).  Column
        # masks fix the horizontal borders; the zero halo fixes the vertical.
        acc = None
        for ky in range(3):
            for kx in range(3):
                k = ky * 3 + kx
                d = (ky - 1) * w + (kx - 1)
                tap = pe_sc[k * g:(k + 1) * g, ext + d:ext + d + hw]
                if kx == 0:
                    tap = tap * mask_ref[0:1, :]   # reads x-1: invalid at x == 0
                elif kx == 2:
                    tap = tap * mask_ref[1:2, :]   # reads x+1: invalid at x == W-1
                acc = tap if acc is None else acc + tap

        o_ref[0] = acc
        # BN statistics for the NEXT layer, folded into this kernel's epilogue
        # (per-sample partials; the wrapper sums them over the batch).
        sum_ref[0] = jnp.sum(acc, axis=1, keepdims=True)
        sq_ref[0] = jnp.sum(acc * acc, axis=1, keepdims=True)

    return kernel


def _fused_bn_relu_conv(groups, scale, shift, w_oihw, h, w):
    n = groups[0].shape[0]
    hw = h * w
    sizes = [int(a.shape[1]) for a in groups]
    offsets = _prefix_offsets(sizes)
    c_in = sum(sizes)
    g = int(w_oihw.shape[0])
    ext = _round_up(w + 1, 128)   # lane-aligned interior offset, >= max tap shift

    # PyTorch conv weight (Cout, Cin, 3, 3) -> stacked (9*Cout, Cin),
    # tap-major rows (row = (ky*3+kx)*Cout + o).
    w_stack = jnp.transpose(w_oihw, (2, 3, 0, 1)).reshape(9 * g, c_in).astype(CONV_DTYPE)
    col = jnp.arange(hw, dtype=jnp.int32) % w
    col_masks = jnp.stack([(col != 0), (col != w - 1)], axis=0).astype(jnp.float32)

    in_specs = ([pl.BlockSpec((1, c, hw), lambda i: (i, 0, 0)) for c in sizes]
                + [pl.BlockSpec((c_in, 1), lambda i: (0, 0)),
                   pl.BlockSpec((c_in, 1), lambda i: (0, 0)),
                   pl.BlockSpec((9 * g, c_in), lambda i: (0, 0)),
                   pl.BlockSpec((2, hw), lambda i: (0, 0))])
    out_specs = (pl.BlockSpec((1, g, hw), lambda i: (i, 0, 0)),
                 pl.BlockSpec((1, g, 1), lambda i: (i, 0, 0)),
                 pl.BlockSpec((1, g, 1), lambda i: (i, 0, 0)))
    out_shape = (jax.ShapeDtypeStruct((n, g, hw), jnp.float32),
                 jax.ShapeDtypeStruct((n, g, 1), jnp.float32),
                 jax.ShapeDtypeStruct((n, g, 1), jnp.float32))

    kernel = _make_conv_kernel(offsets, tuple(sizes), g, h, w, ext)
    new, psum, psq = pl.pallas_call(
        kernel,
        grid_spec=pltpu.PrefetchScalarGridSpec(
            num_scalar_prefetch=0,
            grid=(n,),
            in_specs=in_specs,
            out_specs=out_specs,
            scratch_shapes=[pltpu.VMEM((c_in, hw), CONV_DTYPE),
                            pltpu.VMEM((9 * g, hw + 2 * ext), jnp.float32)]),
        out_shape=out_shape,
        compiler_params=pltpu.CompilerParams(
            dimension_semantics=("parallel",),
            vmem_limit_bytes=_vmem_limit()),
    )(*groups, scale, shift, w_stack, col_masks)
    return new, psum.sum(axis=0).reshape(-1), psq.sum(axis=0).reshape(-1)


# --------------------------------------------------------------------------- #
# DenseBlock forward
# --------------------------------------------------------------------------- #
def dense_block_forward(x_nchw, params):
    """params: list of (gamma[Cin_i], beta[Cin_i], conv_w[growth, Cin_i, 3, 3]).

    Training-mode batch statistics (matching the PyTorch module's forward);
    running_mean / running_var are not tracked (forward-only).
    """
    n, c0, h, w = x_nchw.shape
    hw = h * w
    inv_count = 1.0 / float(n * hw)

    groups = [x_nchw.reshape(n, c0, hw)]       # channel-major, flattened spatial
    s0, q0 = _group_stats(groups[0])           # one-time stats pass on the input
    sums, sqs = [s0], [q0]

    for gamma, beta, conv_w in params:
        # Finalize per-channel scale/shift from cached per-group sums (tiny).
        tot_sum = jnp.concatenate(sums)
        tot_sq = jnp.concatenate(sqs)
        mean = tot_sum * inv_count
        var = jnp.maximum(tot_sq * inv_count - mean * mean, 0.0)
        scale = gamma.astype(jnp.float32) * jax.lax.rsqrt(var + BN_EPS)
        shift = beta.astype(jnp.float32) - mean * scale

        new, nsum, nsq = _fused_bn_relu_conv(
            groups, scale.reshape(-1, 1), shift.reshape(-1, 1), conv_w, h, w)
        groups.append(new)
        sums.append(nsum)
        sqs.append(nsq)

    out = jnp.concatenate(groups, axis=1)      # single O(C_total) assembly
    return out.reshape(n, out.shape[1], h, w)


def reference_forward(x_nchw, params, conv_dtype=jnp.float32):
    """Pure-JAX reference mirroring the PyTorch forward (training-mode BN).

    conv_dtype lets us build a reference whose conv operands match the kernel's
    bf16 MXU inputs (f32 accumulation) for a tight numerical comparison.
    """
    feats = [x_nchw]
    for gamma, beta, conv_w in params:
        cat = jnp.concatenate(feats, axis=1)
        mean = jnp.mean(cat, axis=(0, 2, 3), keepdims=True)
        var = jnp.mean(jnp.square(cat - mean), axis=(0, 2, 3), keepdims=True)
        y = (cat - mean) * jax.lax.rsqrt(var + BN_EPS)
        y = y * gamma.reshape(1, -1, 1, 1) + beta.reshape(1, -1, 1, 1)
        y = jnp.maximum(y, 0.0)
        new = jax.lax.conv_general_dilated(
            y.astype(conv_dtype), conv_w.astype(conv_dtype),
            window_strides=(1, 1), padding=((1, 1), (1, 1)),
            dimension_numbers=("NCHW", "OIHW", "NCHW"),
            preferred_element_type=jnp.float32)
        feats.append(new)
    return jnp.concatenate(feats, axis=1)


if __name__ == "__main__":
    N, in_channels, H, W = 2, 4, 16, 16
    growth_rate, num_layers = 4, 3

    key = jax.random.PRNGKey(0)
    kx, *lkeys = jax.random.split(key, num_layers + 1)
    x = jax.random.normal(kx, (N, in_channels, H, W), jnp.float32)

    params = []
    for i in range(num_layers):
        cin = in_channels + i * growth_rate
        kg, kb, kw = jax.random.split(lkeys[i], 3)
        gamma = 1.0 + 0.1 * jax.random.normal(kg, (cin,), jnp.float32)
        beta = 0.1 * jax.random.normal(kb, (cin,), jnp.float32)
        wgt = jax.random.normal(kw, (growth_rate, cin, 3, 3), jnp.float32)
        wgt = wgt * (1.0 / (9 * cin)) ** 0.5
        params.append((gamma, beta, wgt))

    out = jax.jit(dense_block_forward)(x, params)
    out = jax.block_until_ready(out)
    assert out.shape == (N, in_channels + num_layers * growth_rate, H, W)

    # Tight check against a reference with matching conv numerics (bf16 MXU
    # operands, f32 accumulation), plus a looser sanity check against the exact
    # f32 module semantics (bf16 operand rounding accounts for the slack).
    ref_match = reference_forward(x, params, conv_dtype=CONV_DTYPE)
    ref_f32 = reference_forward(x, params, conv_dtype=jnp.float32)
    err_match = float(jnp.max(jnp.abs(out - ref_match)))
    err_f32 = float(jnp.max(jnp.abs(out - ref_f32)))
    assert jnp.allclose(out, ref_match, atol=1e-2, rtol=1e-2), err_match
    assert jnp.allclose(out, ref_f32, atol=1e-1, rtol=1e-1), err_f32

    print("KERNEL_OK")
</pallas_src>

<mosaic_0001>
module attributes {stable_mosaic.version = 11 : i64} {
  func.func @kernel(%arg0: i32, %arg1: memref<1x4x256xf32, #tpu.memory_space<vmem>>, %arg2: memref<1x4x1xf32, #tpu.memory_space<vmem>>, %arg3: memref<1x4x1xf32, #tpu.memory_space<vmem>>) attributes {dimension_semantics = [#tpu.dimension_semantics<parallel>], iteration_bounds = array<i64: 2>, scalar_prefetch = 0 : i64, scratch_operands = 0 : i64, tpu.core_type = #tpu.core_type<tc>, window_params = [{transform_indices = @transform_0, window_bounds = array<i64: 1, 4, 256>}, {transform_indices = @transform_1, window_bounds = array<i64: 1, 4, 1>}, {transform_indices = @transform_2, window_bounds = array<i64: 1, 4, 1>}]} {
    %c0 = arith.constant 0 : index
    %c0_0 = arith.constant 0 : index
    %c0_1 = arith.constant 0 : index
    %0 = vector.load %arg1[%c0, %c0_0, %c0_1] : memref<1x4x256xf32, #tpu.memory_space<vmem>>, vector<1x4x256xf32>
    %1 = vector.shape_cast %0 : vector<1x4x256xf32> to vector<4x256xf32>
    %cst = arith.constant dense<0.000000e+00> : vector<4xf32>
    %2 = vector.multi_reduction <add>, %1, %cst [1] : vector<4x256xf32> to vector<4xf32>
    %3 = vector.shape_cast %2 : vector<4xf32> to vector<4x1xf32>
    %c0_2 = arith.constant 0 : index
    %c0_3 = arith.constant 0 : index
    %c0_4 = arith.constant 0 : index
    %4 = vector.load %arg2[%c0_2, %c0_3, %c0_4] : memref<1x4x1xf32, #tpu.memory_space<vmem>>, vector<1x4x1xf32>
    %5 = vector.shape_cast %4 : vector<1x4x1xf32> to vector<4x1xf32>
    %6 = vector.shape_cast %3 : vector<4x1xf32> to vector<1x4x1xf32>
    tpu.vector_store %arg2[%c0_2, %c0_3, %c0_4], %6 {strides = array<i32>} : memref<1x4x1xf32, #tpu.memory_space<vmem>>, vector<1x4x1xf32>,
    %7 = arith.mulf %1, %1 : vector<4x256xf32>
    %cst_5 = arith.constant dense<0.000000e+00> : vector<4xf32>
    %8 = vector.multi_reduction <add>, %7, %cst_5 [1] : vector<4x256xf32> to vector<4xf32>
    %9 = vector.shape_cast %8 : vector<4xf32> to vector<4x1xf32>
    %c0_6 = arith.constant 0 : index
    %c0_7 = arith.constant 0 : index
    %c0_8 = arith.constant 0 : index
    %10 = vector.load %arg3[%c0_6, %c0_7, %c0_8] : memref<1x4x1xf32, #tpu.memory_space<vmem>>, vector<1x4x1xf32>
    %11 = vector.shape_cast %10 : vector<1x4x1xf32> to vector<4x1xf32>
    %12 = vector.shape_cast %9 : vector<4x1xf32> to vector<1x4x1xf32>
    tpu.vector_store %arg3[%c0_6, %c0_7, %c0_8], %12 {strides = array<i32>} : memref<1x4x1xf32, #tpu.memory_space<vmem>>, vector<1x4x1xf32>,
    return
  }
  func.func @transform_0(%arg0: i32) -> (i32, i32, i32) {
    %c0_i32 = arith.constant 0 : i32
    %c0_i32_0 = arith.constant 0 : i32
    %c0_i32_1 = arith.constant 0 : i32
    return %arg0, %c0_i32, %c0_i32_0 : i32, i32, i32
  }
  func.func @transform_1(%arg0: i32) -> (i32, i32, i32) {
    %c0_i32 = arith.constant 0 : i32
    %c0_i32_0 = arith.constant 0 : i32
    %c0_i32_1 = arith.constant 0 : i32
    return %arg0, %c0_i32, %c0_i32_0 : i32, i32, i32
  }
  func.func @transform_2(%arg0: i32) -> (i32, i32, i32) {
    %c0_i32 = arith.constant 0 : i32
    %c0_i32_0 = arith.constant 0 : i32
    %c0_i32_1 = arith.constant 0 : i32
    return %arg0, %c0_i32, %c0_i32_0 : i32, i32, i32
  }
}

module attributes {stable_mosaic.version = 11 : i64} {
  func.func @kernel(%arg0: i32, %arg1: memref<1x4x256xf32, #tpu.memory_space<vmem>>, %arg2: memref<1x4x256xf32, #tpu.memory_space<vmem>>, %arg3: memref<8x1xf32, #tpu.memory_space<vmem>>, %arg4: memref<8x1xf32, #tpu.memory_space<vmem>>, %arg5: memref<36x8xbf16, #tpu.memory_space<vmem>>, %arg6: memref<2x256xf32, #tpu.memory_space<vmem>>, %arg7: memref<1x4x256xf32, #tpu.memory_space<vmem>>, %arg8: memref<1x4x1xf32, #tpu.memory_space<vmem>>, %arg9: memref<1x4x1xf32, #tpu.memory_space<vmem>>, %arg10: memref<8x256xbf16, #tpu.memory_space<vmem>>, %arg11: memref<36x512xf32, #tpu.memory_space<vmem>>) attributes {dimension_semantics = [#tpu.dimension_semantics<parallel>], iteration_bounds = array<i64: 2>, scalar_prefetch = 0 : i64, scratch_operands = 2 : i64, tpu.core_type = #tpu.core_type<tc>, window_params = [{transform_indices = @transform_0, window_bounds = array<i64: 1, 4, 256>}, {transform_indices = @transform_1, window_bounds = array<i64: 1, 4, 256>}, {pipeline_mode = #tpu.pipeline_mode<synchronous>, transform_indices = @transform_2, window_bounds = array<i64: 8, 1>}, {pipeline_mode = #tpu.pipeline_mode<synchronous>, transform_indices = @transform_3, window_bounds = array<i64: 8, 1>}, {pipeline_mode = #tpu.pipeline_mode<synchronous>, transform_indices = @transform_4, window_bounds = array<i64: 36, 8>}, {pipeline_mode = #tpu.pipeline_mode<synchronous>, transform_indices = @transform_5, window_bounds = array<i64: 2, 256>}, {transform_indices = @transform_6, window_bounds = array<i64: 1, 4, 256>}, {transform_indices = @transform_7, window_bounds = array<i64: 1, 4, 1>}, {transform_indices = @transform_8, window_bounds = array<i64: 1, 4, 1>}]} {
    %c0 = arith.constant 0 : index
    %c0_0 = arith.constant 0 : index
    %c0_1 = arith.constant 0 : index
    %0 = vector.load %arg1[%c0, %c0_0, %c0_1] : memref<1x4x256xf32, #tpu.memory_space<vmem>>, vector<1x4x256xf32>
    %1 = vector.shape_cast %0 : vector<1x4x256xf32> to vector<4x256xf32>
    %c0_2 = arith.constant 0 : index
    %c0_3 = arith.constant 0 : index
    %2 = vector.load %arg3[%c0_2, %c0_3] : memref<8x1xf32, #tpu.memory_space<vmem>>, vector<4x1xf32>
    %3 = vector.broadcast %2 : vector<4x1xf32> to vector<4x256xf32>
    %4 = arith.mulf %1, %3 : vector<4x256xf32>
    %c0_4 = arith.constant 0 : index
    %c0_5 = arith.constant 0 : index
    %5 = vector.load %arg4[%c0_4, %c0_5] : memref<8x1xf32, #tpu.memory_space<vmem>>, vector<4x1xf32>
    %6 = vector.broadcast %5 : vector<4x1xf32> to vector<4x256xf32>
    %7 = arith.addf %4, %6 : vector<4x256xf32>
    %cst = arith.constant 0.000000e+00 : f32
    %8 = vector.broadcast %cst : f32 to vector<4x256xf32>
    %9 = arith.maximumf %7, %8 : vector<4x256xf32>
    %10 = arith.truncf %9 : vector<4x256xf32> to vector<4x256xbf16>
    %c0_6 = arith.constant 0 : index
    %c0_7 = arith.constant 0 : index
    %11 = vector.load %arg10[%c0_6, %c0_7] : memref<8x256xbf16, #tpu.memory_space<vmem>>, vector<4x256xbf16>
    tpu.vector_store %arg10[%c0_6, %c0_7], %10 {strides = array<i32>} : memref<8x256xbf16, #tpu.memory_space<vmem>>, vector<4x256xbf16>,
    %c0_8 = arith.constant 0 : index
    %c0_9 = arith.constant 0 : index
    %c0_10 = arith.constant 0 : index
    %12 = vector.load %arg2[%c0_8, %c0_9, %c0_10] : memref<1x4x256xf32, #tpu.memory_space<vmem>>, vector<1x4x256xf32>
    %13 = vector.shape_cast %12 : vector<1x4x256xf32> to vector<4x256xf32>
    %c4 = arith.constant 4 : index
    %c0_11 = arith.constant 0 : index
    %14 = vector.load %arg3[%c4, %c0_11] : memref<8x1xf32, #tpu.memory_space<vmem>>, vector<4x1xf32>
    %15 = vector.broadcast %14 : vector<4x1xf32> to vector<4x256xf32>
    %16 = arith.mulf %13, %15 : vector<4x256xf32>
    %c4_12 = arith.constant 4 : index
    %c0_13 = arith.constant 0 : index
    %17 = vector.load %arg4[%c4_12, %c0_13] : memref<8x1xf32, #tpu.memory_space<vmem>>, vector<4x1xf32>
    %18 = vector.broadcast %17 : vector<4x1xf32> to vector<4x256xf32>
    %19 = arith.addf %16, %18 : vector<4x256xf32>
    %cst_14 = arith.constant 0.000000e+00 : f32
    %20 = vector.broadcast %cst_14 : f32 to vector<4x256xf32>
    %21 = arith.maximumf %19, %20 : vector<4x256xf32>
    %22 = arith.truncf %21 : vector<4x256xf32> to vector<4x256xbf16>
    %c4_15 = arith.constant 4 : index
    %c0_16 = arith.constant 0 : index
    %23 = vector.load %arg10[%c4_15, %c0_16] : memref<8x256xbf16, #tpu.memory_space<vmem>>, vector<4x256xbf16>
    tpu.vector_store %arg10[%c4_15, %c0_16], %22 {strides = array<i32>} : memref<8x256xbf16, #tpu.memory_space<vmem>>, vector<4x256xbf16>,
    %c0_17 = arith.constant 0 : index
    %c0_18 = arith.constant 0 : index
    %24 = vector.load %arg5[%c0_17, %c0_18] : memref<36x8xbf16, #tpu.memory_space<vmem>>, vector<36x8xbf16>
    %c0_19 = arith.constant 0 : index
    %c0_20 = arith.constant 0 : index
    %25 = vector.load %arg10[%c0_19, %c0_20] : memref<8x256xbf16, #tpu.memory_space<vmem>>, vector<8x256xbf16>
    %cst_21 = arith.constant dense<0.000000e+00> : vector<36x256xf32>
    %26 = tpu.matmul %24, %25, %cst_21 {dimension_numbers = #tpu.dot_dimension_numbers<[1], [0], [0], [1], [0, 0, 1, 1], [], []>} : vector<36x8xbf16>, vector<8x256xbf16>, vector<36x256xf32> -> vector<36x256xf32>
    %cst_22 = arith.constant 0.000000e+00 : f32
    %27 = vector.broadcast %cst_22 : f32 to vector<36x128xf32>
    %c0_23 = arith.constant 0 : index
    %c0_24 = arith.constant 0 : index
    %28 = vector.load %arg11[%c0_23, %c0_24] : memref<36x512xf32, #tpu.memory_space<vmem>>, vector<36x128xf32>
    tpu.vector_store %arg11[%c0_23, %c0_24], %27 {strides = array<i32>} : memref<36x512xf32, #tpu.memory_space<vmem>>, vector<36x128xf32>,
    %c0_25 = arith.constant 0 : index
    %c384 = arith.constant 384 : index
    %29 = vector.load %arg11[%c0_25, %c384] : memref<36x512xf32, #tpu.memory_space<vmem>>, vector<36x128xf32>
    tpu.vector_store %arg11[%c0_25, %c384], %27 {strides = array<i32>} : memref<36x512xf32, #tpu.memory_space<vmem>>, vector<36x128xf32>,
    %c0_26 = arith.constant 0 : index
    %c128 = arith.constant 128 : index
    %30 = vector.load %arg11[%c0_26, %c128] : memref<36x512xf32, #tpu.memory_space<vmem>>, vector<36x256xf32>
    tpu.vector_store %arg11[%c0_26, %c128], %26 {strides = array<i32>} : memref<36x512xf32, #tpu.memory_space<vmem>>, vector<36x256xf32>,
    %c0_27 = arith.constant 0 : index
    %c111 = arith.constant 111 : index
    %31 = vector.load %arg11[%c0_27, %c111] : memref<36x512xf32, #tpu.memory_space<vmem>>, vector<4x256xf32>
    %c0_28 = arith.constant 0 : index
    %c0_29 = arith.constant 0 : index
    %32 = vector.load %arg6[%c0_28, %c0_29] : memref<2x256xf32, #tpu.memory_space<vmem>>, vector<1x256xf32>
    %33 = vector.broadcast %32 : vector<1x256xf32> to vector<4x256xf32>
    %34 = arith.mulf %31, %33 : vector<4x256xf32>
    %c4_30 = arith.constant 4 : index
    %c112 = arith.constant 112 : index
    %35 = vector.load %arg11[%c4_30, %c112] : memref<36x512xf32, #tpu.memory_space<vmem>>, vector<4x256xf32>
    %36 = arith.addf %34, %35 : vector<4x256xf32>
    %c8 = arith.constant 8 : index
    %c113 = arith.constant 113 : index
    %37 = vector.load %arg11[%c8, %c113] : memref<36x512xf32, #tpu.memory_space<vmem>>, vector<4x256xf32>
    %c1 = arith.constant 1 : index
    %c0_31 = arith.constant 0 : index
    %38 = vector.load %arg6[%c1, %c0_31] : memref<2x256xf32, #tpu.memory_space<vmem>>, vector<1x256xf32>
    %39 = vector.broadcast %38 : vector<1x256xf32> to vector<4x256xf32>
    %40 = arith.mulf %37, %39 : vector<4x256xf32>
    %41 = arith.addf %36, %40 : vector<4x256xf32>
    %c12 = arith.constant 12 : index
    %c127 = arith.constant 127 : index
    %42 = vector.load %arg11[%c12, %c127] : memref<36x512xf32, #tpu.memory_space<vmem>>, vector<4x256xf32>
    %c0_32 = arith.constant 0 : index
    %c0_33 = arith.constant 0 : index
    %43 = vector.load %arg6[%c0_32, %c0_33] : memref<2x256xf32, #tpu.memory_space<vmem>>, vector<1x256xf32>
    %44 = vector.broadcast %43 : vector<1x256xf32> to vector<4x256xf32>
    %45 = arith.mulf %42, %44 : vector<4x256xf32>
    %46 = arith.addf %41, %45 : vector<4x256xf32>
    %c16 = arith.constant 16 : index
    %c128_34 = arith.constant 128 : index
    %47 = vector.load %arg11[%c16, %c128_34] : memref<36x512xf32, #tpu.memory_space<vmem>>, vector<4x256xf32>
    %48 = arith.addf %46, %47 : vector<4x256xf32>
    %c20 = arith.constant 20 : index
    %c129 = arith.constant 129 : index
    %49 = vector.load %arg11[%c20, %c129] : memref<36x512xf32, #tpu.memory_space<vmem>>, vector<4x256xf32>
    %c1_35 = arith.constant 1 : index
    %c0_36 = arith.constant 0 : index
    %50 = vector.load %arg6[%c1_35, %c0_36] : memref<2x256xf32, #tpu.memory_space<vmem>>, vector<1x256xf32>
    %51 = vector.broadcast %50 : vector<1x256xf32> to vector<4x256xf32>
    %52 = arith.mulf %49, %51 : vector<4x256xf32>
    %53 = arith.addf %48, %52 : vector<4x256xf32>
    %c24 = arith.constant 24 : index
    %c143 = arith.constant 143 : index
    %54 = vector.load %arg11[%c24, %c143] : memref<36x512xf32, #tpu.memory_space<vmem>>, vector<4x256xf32>
    %c0_37 = arith.constant 0 : index
    %c0_38 = arith.constant 0 : index
    %55 = vector.load %arg6[%c0_37, %c0_38] : memref<2x256xf32, #tpu.memory_space<vmem>>, vector<1x256xf32>
    %56 = vector.broadcast %55 : vector<1x256xf32> to vector<4x256xf32>
    %57 = arith.mulf %54, %56 : vector<4x256xf32>
    %58 = arith.addf %53, %57 : vector<4x256xf32>
    %c28 = arith.constant 28 : index
    %c144 = arith.constant 144 : index
    %59 = vector.load %arg11[%c28, %c144] : memref<36x512xf32, #tpu.memory_space<vmem>>, vector<4x256xf32>
    %60 = arith.addf %58, %59 : vector<4x256xf32>
    %c32 = arith.constant 32 : index
    %c145 = arith.constant 145 : index
    %61 = vector.load %arg11[%c32, %c145] : memref<36x512xf32, #tpu.memory_space<vmem>>, vector<4x256xf32>
    %c1_39 = arith.constant 1 : index
    %c0_40 = arith.constant 0 : index
    %62 = vector.load %arg6[%c1_39, %c0_40] : memref<2x256xf32, #tpu.memory_space<vmem>>, vector<1x256xf32>
    %63 = vector.broadcast %62 : vector<1x256xf32> to vector<4x256xf32>
    %64 = arith.mulf %61, %63 : vector<4x256xf32>
    %65 = arith.addf %60, %64 : vector<4x256xf32>
    %c0_41 = arith.constant 0 : index
    %c0_42 = arith.constant 0 : index
    %c0_43 = arith.constant 0 : index
    %66 = vector.load %arg7[%c0_41, %c0_42, %c0_43] : memref<1x4x256xf32, #tpu.memory_space<vmem>>, vector<1x4x256xf32>
    %67 = vector.shape_cast %66 : vector<1x4x256xf32> to vector<4x256xf32>
    %68 = vector.shape_cast %65 : vector<4x256xf32> to vector<1x4x256xf32>
    tpu.vector_store %arg7[%c0_41, %c0_42, %c0_43], %68 {strides = array<i32>} : memref<1x4x256xf32, #tpu.memory_space<vmem>>, vector<1x4x256xf32>,
    %cst_44 = arith.constant dense<0.000000e+00> : vector<4xf32>
    %69 = vector.multi_reduction <add>, %65, %cst_44 [1] : vector<4x256xf32> to vector<4xf32>
    %70 = vector.shape_cast %69 : vector<4xf32> to vector<4x1xf32>
    %c0_45 = arith.constant 0 : index
    %c0_46 = arith.constant 0 : index
    %c0_47 = arith.constant 0 : index
    %71 = vector.load %arg8[%c0_45, %c0_46, %c0_47] : memref<1x4x1xf32, #tpu.memory_space<vmem>>, vector<1x4x1xf32>
    %72 = vector.shape_cast %71 : vector<1x4x1xf32> to vector<4x1xf32>
    %73 = vector.shape_cast %70 : vector<4x1xf32> to vector<1x4x1xf32>
    tpu.vector_store %arg8[%c0_45, %c0_46, %c0_47], %73 {strides = array<i32>} : memref<1x4x1xf32, #tpu.memory_space<vmem>>, vector<1x4x1xf32>,
    %74 = arith.mulf %65, %65 : vector<4x256xf32>
    %cst_48 = arith.constant dense<0.000000e+00> : vector<4xf32>
    %75 = vector.multi_reduction <add>, %74, %cst_48 [1] : vector<4x256xf32> to vector<4xf32>
    %76 = vector.shape_cast %75 : vector<4xf32> to vector<4x1xf32>
    %c0_49 = arith.constant 0 : index
    %c0_50 = arith.constant 0 : index
    %c0_51 = arith.constant 0 : index
    %77 = vector.load %arg9[%c0_49, %c0_50, %c0_51] : memref<1x4x1xf32, #tpu.memory_space<vmem>>, vector<1x4x1xf32>
    %78 = vector.shape_cast %77 : vector<1x4x1xf32> to vector<4x1xf32>
    %79 = vector.shape_cast %76 : vector<4x1xf32> to vector<1x4x1xf32>
    tpu.vector_store %arg9[%c0_49, %c0_50, %c0_51], %79 {strides = array<i32>} : memref<1x4x1xf32, #tpu.memory_space<vmem>>, vector<1x4x1xf32>,
    return
  }
  func.func @transform_0(%arg0: i32) -> (i32, i32, i32) {
    %c0_i32 = arith.constant 0 : i32
    %c0_i32_0 = arith.constant 0 : i32
    %c0_i32_1 = arith.constant 0 : i32
    return %arg0, %c0_i32, %c0_i32_0 : i32, i32, i32
  }
  func.func @transform_1(%arg0: i32) -> (i32, i32, i32) {
    %c0_i32 = arith.constant 0 : i32
    %c0_i32_0 = arith.constant 0 : i32
    %c0_i32_1 = arith.constant 0 : i32
    return %arg0, %c0_i32, %c0_i32_0 : i32, i32, i32
  }
  func.func @transform_2(%arg0: i32) -> (i32, i32) {
    %c0_i32 = arith.constant 0 : i32
    %c0_i32_0 = arith.constant 0 : i32
    %c0_i32_1 = arith.constant 0 : i32
    return %c0_i32, %c0_i32_0 : i32, i32
  }
  func.func @transform_3(%arg0: i32) -> (i32, i32) {
    %c0_i32 = arith.constant 0 : i32
    %c0_i32_0 = arith.constant 0 : i32
    %c0_i32_1 = arith.constant 0 : i32
    return %c0_i32, %c0_i32_0 : i32, i32
  }
  func.func @transform_4(%arg0: i32) -> (i32, i32) {
    %c0_i32 = arith.constant 0 : i32
    %c0_i32_0 = arith.constant 0 : i32
    %c0_i32_1 = arith.constant 0 : i32
    return %c0_i32, %c0_i32_0 : i32, i32
  }
  func.func @transform_5(%arg0: i32) -> (i32, i32) {
    %c0_i32 = arith.constant 0 : i32
    %c0_i32_0 = arith.constant 0 : i32
    %c0_i32_1 = arith.constant 0 : i32
    return %c0_i32, %c0_i32_0 : i32, i32
  }
  func.func @transform_6(%arg0: i32) -> (i32, i32, i32) {
    %c0_i32 = arith.constant 0 : i32
    %c0_i32_0 = arith.constant 0 : i32
    %c0_i32_1 = arith.constant 0 : i32
    return %arg0, %c0_i32, %c0_i32_0 : i32, i32, i32
  }
  func.func @transform_7(%arg0: i32) -> (i32, i32, i32) {
    %c0_i32 = arith.constant 0 : i32
    %c0_i32_0 = arith.constant 0 : i32
    %c0_i32_1 = arith.constant 0 : i32
    return %arg0, %c0_i32, %c0_i32_0 : i32, i32, i32
  }
  func.func @transform_8(%arg0: i32) -> (i32, i32, i32) {
    %c0_i32 = arith.constant 0 : i32
    %c0_i32_0 = arith.constant 0 : i32
    %c0_i32_1 = arith.constant 0 : i32
    return %arg0, %c0_i32, %c0_i32_0 : i32, i32, i32
  }
}

module attributes {stable_mosaic.version = 11 : i64} {
  func.func @kernel(%arg0: i32, %arg1: memref<1x4x256xf32, #tpu.memory_space<vmem>>, %arg2: memref<4x1xf32, #tpu.memory_space<vmem>>, %arg3: memref<4x1xf32, #tpu.memory_space<vmem>>, %arg4: memref<36x4xbf16, #tpu.memory_space<vmem>>, %arg5: memref<2x256xf32, #tpu.memory_space<vmem>>, %arg6: memref<1x4x256xf32, #tpu.memory_space<vmem>>, %arg7: memref<1x4x1xf32, #tpu.memory_space<vmem>>, %arg8: memref<1x4x1xf32, #tpu.memory_space<vmem>>, %arg9: memref<4x256xbf16, #tpu.memory_space<vmem>>, %arg10: memref<36x512xf32, #tpu.memory_space<vmem>>) attributes {dimension_semantics = [#tpu.dimension_semantics<parallel>], iteration_bounds = array<i64: 2>, scalar_prefetch = 0 : i64, scratch_operands = 2 : i64, tpu.core_type = #tpu.core_type<tc>, window_params = [{transform_indices = @transform_0, window_bounds = array<i64: 1, 4, 256>}, {pipeline_mode = #tpu.pipeline_mode<synchronous>, transform_indices = @transform_1, window_bounds = array<i64: 4, 1>}, {pipeline_mode = #tpu.pipeline_mode<synchronous>, transform_indices = @transform_2, window_bounds = array<i64: 4, 1>}, {pipeline_mode = #tpu.pipeline_mode<synchronous>, transform_indices = @transform_3, window_bounds = array<i64: 36, 4>}, {pipeline_mode = #tpu.pipeline_mode<synchronous>, transform_indices = @transform_4, window_bounds = array<i64: 2, 256>}, {transform_indices = @transform_5, window_bounds = array<i64: 1, 4, 256>}, {transform_indices = @transform_6, window_bounds = array<i64: 1, 4, 1>}, {transform_indices = @transform_7, window_bounds = array<i64: 1, 4, 1>}]} {
    %c0 = arith.constant 0 : index
    %c0_0 = arith.constant 0 : index
    %c0_1 = arith.constant 0 : index
    %0 = vector.load %arg1[%c0, %c0_0, %c0_1] : memref<1x4x256xf32, #tpu.memory_space<vmem>>, vector<1x4x256xf32>
    %1 = vector.shape_cast %0 : vector<1x4x256xf32> to vector<4x256xf32>
    %c0_2 = arith.constant 0 : index
    %c0_3 = arith.constant 0 : index
    %2 = vector.load %arg2[%c0_2, %c0_3] : memref<4x1xf32, #tpu.memory_space<vmem>>, vector<4x1xf32>
    %3 = vector.broadcast %2 : vector<4x1xf32> to vector<4x256xf32>
    %4 = arith.mulf %1, %3 : vector<4x256xf32>
    %c0_4 = arith.constant 0 : index
    %c0_5 = arith.constant 0 : index
    %5 = vector.load %arg3[%c0_4, %c0_5] : memref<4x1xf32, #tpu.memory_space<vmem>>, vector<4x1xf32>
    %6 = vector.broadcast %5 : vector<4x1xf32> to vector<4x256xf32>
    %7 = arith.addf %4, %6 : vector<4x256xf32>
    %cst = arith.constant 0.000000e+00 : f32
    %8 = vector.broadcast %cst : f32 to vector<4x256xf32>
    %9 = arith.maximumf %7, %8 : vector<4x256xf32>
    %10 = arith.truncf %9 : vector<4x256xf32> to vector<4x256xbf16>
    %c0_6 = arith.constant 0 : index
    %c0_7 = arith.constant 0 : index
    %11 = vector.load %arg9[%c0_6, %c0_7] : memref<4x256xbf16, #tpu.memory_space<vmem>>, vector<4x256xbf16>
    tpu.vector_store %arg9[%c0_6, %c0_7], %10 {strides = array<i32>} : memref<4x256xbf16, #tpu.memory_space<vmem>>, vector<4x256xbf16>,
    %c0_8 = arith.constant 0 : index
    %c0_9 = arith.constant 0 : index
    %12 = vector.load %arg4[%c0_8, %c0_9] : memref<36x4xbf16, #tpu.memory_space<vmem>>, vector<36x4xbf16>
    %c0_10 = arith.constant 0 : index
    %c0_11 = arith.constant 0 : index
    %13 = vector.load %arg9[%c0_10, %c0_11] : memref<4x256xbf16, #tpu.memory_space<vmem>>, vector<4x256xbf16>
    %cst_12 = arith.constant dense<0.000000e+00> : vector<36x256xf32>
    %14 = tpu.matmul %12, %13, %cst_12 {dimension_numbers = #tpu.dot_dimension_numbers<[1], [0], [0], [1], [0, 0, 1, 1], [], []>} : vector<36x4xbf16>, vector<4x256xbf16>, vector<36x256xf32> -> vector<36x256xf32>
    %cst_13 = arith.constant 0.000000e+00 : f32
    %15 = vector.broadcast %cst_13 : f32 to vector<36x128xf32>
    %c0_14 = arith.constant 0 : index
    %c0_15 = arith.constant 0 : index
    %16 = vector.load %arg10[%c0_14, %c0_15] : memref<36x512xf32, #tpu.memory_space<vmem>>, vector<36x128xf32>
    tpu.vector_store %arg10[%c0_14, %c0_15], %15 {strides = array<i32>} : memref<36x512xf32, #tpu.memory_space<vmem>>, vector<36x128xf32>,
    %c0_16 = arith.constant 0 : index
    %c384 = arith.constant 384 : index
    %17 = vector.load %arg10[%c0_16, %c384] : memref<36x512xf32, #tpu.memory_space<vmem>>, vector<36x128xf32>
    tpu.vector_store %arg10[%c0_16, %c384], %15 {strides = array<i32>} : memref<36x512xf32, #tpu.memory_space<vmem>>, vector<36x128xf32>,
    %c0_17 = arith.constant 0 : index
    %c128 = arith.constant 128 : index
    %18 = vector.load %arg10[%c0_17, %c128] : memref<36x512xf32, #tpu.memory_space<vmem>>, vector<36x256xf32>
    tpu.vector_store %arg10[%c0_17, %c128], %14 {strides = array<i32>} : memref<36x512xf32, #tpu.memory_space<vmem>>, vector<36x256xf32>,
    %c0_18 = arith.constant 0 : index
    %c111 = arith.constant 111 : index
    %19 = vector.load %arg10[%c0_18, %c111] : memref<36x512xf32, #tpu.memory_space<vmem>>, vector<4x256xf32>
    %c0_19 = arith.constant 0 : index
    %c0_20 = arith.constant 0 : index
    %20 = vector.load %arg5[%c0_19, %c0_20] : memref<2x256xf32, #tpu.memory_space<vmem>>, vector<1x256xf32>
    %21 = vector.broadcast %20 : vector<1x256xf32> to vector<4x256xf32>
    %22 = arith.mulf %19, %21 : vector<4x256xf32>
    %c4 = arith.constant 4 : index
    %c112 = arith.constant 112 : index
    %23 = vector.load %arg10[%c4, %c112] : memref<36x512xf32, #tpu.memory_space<vmem>>, vector<4x256xf32>
    %24 = arith.addf %22, %23 : vector<4x256xf32>
    %c8 = arith.constant 8 : index
    %c113 = arith.constant 113 : index
    %25 = vector.load %arg10[%c8, %c113] : memref<36x512xf32, #tpu.memory_space<vmem>>, vector<4x256xf32>
    %c1 = arith.constant 1 : index
    %c0_21 = arith.constant 0 : index
    %26 = vector.load %arg5[%c1, %c0_21] : memref<2x256xf32, #tpu.memory_space<vmem>>, vector<1x256xf32>
    %27 = vector.broadcast %26 : vector<1x256xf32> to vector<4x256xf32>
    %28 = arith.mulf %25, %27 : vector<4x256xf32>
    %29 = arith.addf %24, %28 : vector<4x256xf32>
    %c12 = arith.constant 12 : index
    %c127 = arith.constant 127 : index
    %30 = vector.load %arg10[%c12, %c127] : memref<36x512xf32, #tpu.memory_space<vmem>>, vector<4x256xf32>
    %c0_22 = arith.constant 0 : index
    %c0_23 = arith.constant 0 : index
    %31 = vector.load %arg5[%c0_22, %c0_23] : memref<2x256xf32, #tpu.memory_space<vmem>>, vector<1x256xf32>
    %32 = vector.broadcast %31 : vector<1x256xf32> to vector<4x256xf32>
    %33 = arith.mulf %30, %32 : vector<4x256xf32>
    %34 = arith.addf %29, %33 : vector<4x256xf32>
    %c16 = arith.constant 16 : index
    %c128_24 = arith.constant 128 : index
    %35 = vector.load %arg10[%c16, %c128_24] : memref<36x512xf32, #tpu.memory_space<vmem>>, vector<4x256xf32>
    %36 = arith.addf %34, %35 : vector<4x256xf32>
    %c20 = arith.constant 20 : index
    %c129 = arith.constant 129 : index
    %37 = vector.load %arg10[%c20, %c129] : memref<36x512xf32, #tpu.memory_space<vmem>>, vector<4x256xf32>
    %c1_25 = arith.constant 1 : index
    %c0_26 = arith.constant 0 : index
    %38 = vector.load %arg5[%c1_25, %c0_26] : memref<2x256xf32, #tpu.memory_space<vmem>>, vector<1x256xf32>
    %39 = vector.broadcast %38 : vector<1x256xf32> to vector<4x256xf32>
    %40 = arith.mulf %37, %39 : vector<4x256xf32>
    %41 = arith.addf %36, %40 : vector<4x256xf32>
    %c24 = arith.constant 24 : index
    %c143 = arith.constant 143 : index
    %42 = vector.load %arg10[%c24, %c143] : memref<36x512xf32, #tpu.memory_space<vmem>>, vector<4x256xf32>
    %c0_27 = arith.constant 0 : index
    %c0_28 = arith.constant 0 : index
    %43 = vector.load %arg5[%c0_27, %c0_28] : memref<2x256xf32, #tpu.memory_space<vmem>>, vector<1x256xf32>
    %44 = vector.broadcast %43 : vector<1x256xf32> to vector<4x256xf32>
    %45 = arith.mulf %42, %44 : vector<4x256xf32>
    %46 = arith.addf %41, %45 : vector<4x256xf32>
    %c28 = arith.constant 28 : index
    %c144 = arith.constant 144 : index
    %47 = vector.load %arg10[%c28, %c144] : memref<36x512xf32, #tpu.memory_space<vmem>>, vector<4x256xf32>
    %48 = arith.addf %46, %47 : vector<4x256xf32>
    %c32 = arith.constant 32 : index
    %c145 = arith.constant 145 : index
    %49 = vector.load %arg10[%c32, %c145] : memref<36x512xf32, #tpu.memory_space<vmem>>, vector<4x256xf32>
    %c1_29 = arith.constant 1 : index
    %c0_30 = arith.constant 0 : index
    %50 = vector.load %arg5[%c1_29, %c0_30] : memref<2x256xf32, #tpu.memory_space<vmem>>, vector<1x256xf32>
    %51 = vector.broadcast %50 : vector<1x256xf32> to vector<4x256xf32>
    %52 = arith.mulf %49, %51 : vector<4x256xf32>
    %53 = arith.addf %48, %52 : vector<4x256xf32>
    %c0_31 = arith.constant 0 : index
    %c0_32 = arith.constant 0 : index
    %c0_33 = arith.constant 0 : index
    %54 = vector.load %arg6[%c0_31, %c0_32, %c0_33] : memref<1x4x256xf32, #tpu.memory_space<vmem>>, vector<1x4x256xf32>
    %55 = vector.shape_cast %54 : vector<1x4x256xf32> to vector<4x256xf32>
    %56 = vector.shape_cast %53 : vector<4x256xf32> to vector<1x4x256xf32>
    tpu.vector_store %arg6[%c0_31, %c0_32, %c0_33], %56 {strides = array<i32>} : memref<1x4x256xf32, #tpu.memory_space<vmem>>, vector<1x4x256xf32>,
    %cst_34 = arith.constant dense<0.000000e+00> : vector<4xf32>
    %57 = vector.multi_reduction <add>, %53, %cst_34 [1] : vector<4x256xf32> to vector<4xf32>
    %58 = vector.shape_cast %57 : vector<4xf32> to vector<4x1xf32>
    %c0_35 = arith.constant 0 : index
    %c0_36 = arith.constant 0 : index
    %c0_37 = arith.constant 0 : index
    %59 = vector.load %arg7[%c0_35, %c0_36, %c0_37] : memref<1x4x1xf32, #tpu.memory_space<vmem>>, vector<1x4x1xf32>
    %60 = vector.shape_cast %59 : vector<1x4x1xf32> to vector<4x1xf32>
    %61 = vector.shape_cast %58 : vector<4x1xf32> to vector<1x4x1xf32>
    tpu.vector_store %arg7[%c0_35, %c0_36, %c0_37], %61 {strides = array<i32>} : memref<1x4x1xf32, #tpu.memory_space<vmem>>, vector<1x4x1xf32>,
    %62 = arith.mulf %53, %53 : vector<4x256xf32>
    %cst_38 = arith.constant dense<0.000000e+00> : vector<4xf32>
    %63 = vector.multi_reduction <add>, %62, %cst_38 [1] : vector<4x256xf32> to vector<4xf32>
    %64 = vector.shape_cast %63 : vector<4xf32> to vector<4x1xf32>
    %c0_39 = arith.constant 0 : index
    %c0_40 = arith.constant 0 : index
    %c0_41 = arith.constant 0 : index
    %65 = vector.load %arg8[%c0_39, %c0_40, %c0_41] : memref<1x4x1xf32, #tpu.memory_space<vmem>>, vector<1x4x1xf32>
    %66 = vector.shape_cast %65 : vector<1x4x1xf32> to vector<4x1xf32>
    %67 = vector.shape_cast %64 : vector<4x1xf32> to vector<1x4x1xf32>
    tpu.vector_store %arg8[%c0_39, %c0_40, %c0_41], %67 {strides = array<i32>} : memref<1x4x1xf32, #tpu.memory_space<vmem>>, vector<1x4x1xf32>,
    return
  }
  func.func @transform_0(%arg0: i32) -> (i32, i32, i32) {
    %c0_i32 = arith.constant 0 : i32
    %c0_i32_0 = arith.constant 0 : i32
    %c0_i32_1 = arith.constant 0 : i32
    return %arg0, %c0_i32, %c0_i32_0 : i32, i32, i32
  }
  func.func @transform_1(%arg0: i32) -> (i32, i32) {
    %c0_i32 = arith.constant 0 : i32
    %c0_i32_0 = arith.constant 0 : i32
    %c0_i32_1 = arith.constant 0 : i32
    return %c0_i32, %c0_i32_0 : i32, i32
  }
  func.func @transform_2(%arg0: i32) -> (i32, i32) {
    %c0_i32 = arith.constant 0 : i32
    %c0_i32_0 = arith.constant 0 : i32
    %c0_i32_1 = arith.constant 0 : i32
    return %c0_i32, %c0_i32_0 : i32, i32
  }
  func.func @transform_3(%arg0: i32) -> (i32, i32) {
    %c0_i32 = arith.constant 0 : i32
    %c0_i32_0 = arith.constant 0 : i32
    %c0_i32_1 = arith.constant 0 : i32
    return %c0_i32, %c0_i32_0 : i32, i32
  }
  func.func @transform_4(%arg0: i32) -> (i32, i32) {
    %c0_i32 = arith.constant 0 : i32
    %c0_i32_0 = arith.constant 0 : i32
    %c0_i32_1 = arith.constant 0 : i32
    return %c0_i32, %c0_i32_0 : i32, i32
  }
  func.func @transform_5(%arg0: i32) -> (i32, i32, i32) {
    %c0_i32 = arith.constant 0 : i32
    %c0_i32_0 = arith.constant 0 : i32
    %c0_i32_1 = arith.constant 0 : i32
    return %arg0, %c0_i32, %c0_i32_0 : i32, i32, i32
  }
  func.func @transform_6(%arg0: i32) -> (i32, i32, i32) {
    %c0_i32 = arith.constant 0 : i32
    %c0_i32_0 = arith.constant 0 : i32
    %c0_i32_1 = arith.constant 0 : i32
    return %arg0, %c0_i32, %c0_i32_0 : i32, i32, i32
  }
  func.func @transform_7(%arg0: i32) -> (i32, i32, i32) {
    %c0_i32 = arith.constant 0 : i32
    %c0_i32_0 = arith.constant 0 : i32
    %c0_i32_1 = arith.constant 0 : i32
    return %arg0, %c0_i32, %c0_i32_0 : i32, i32, i32
  }
}

module attributes {stable_mosaic.version = 11 : i64} {
  func.func @kernel(%arg0: i32, %arg1: memref<1x4x256xf32, #tpu.memory_space<vmem>>, %arg2: memref<1x4x256xf32, #tpu.memory_space<vmem>>, %arg3: memref<1x4x256xf32, #tpu.memory_space<vmem>>, %arg4: memref<12x1xf32, #tpu.memory_space<vmem>>, %arg5: memref<12x1xf32, #tpu.memory_space<vmem>>, %arg6: memref<36x12xbf16, #tpu.memory_space<vmem>>, %arg7: memref<2x256xf32, #tpu.memory_space<vmem>>, %arg8: memref<1x4x256xf32, #tpu.memory_space<vmem>>, %arg9: memref<1x4x1xf32, #tpu.memory_space<vmem>>, %arg10: memref<1x4x1xf32, #tpu.memory_space<vmem>>, %arg11: memref<12x256xbf16, #tpu.memory_space<vmem>>, %arg12: memref<36x512xf32, #tpu.memory_space<vmem>>) attributes {dimension_semantics = [#tpu.dimension_semantics<parallel>], iteration_bounds = array<i64: 2>, scalar_prefetch = 0 : i64, scratch_operands = 2 : i64, tpu.core_type = #tpu.core_type<tc>, window_params = [{transform_indices = @transform_0, window_bounds = array<i64: 1, 4, 256>}, {transform_indices = @transform_1, window_bounds = array<i64: 1, 4, 256>}, {transform_indices = @transform_2, window_bounds = array<i64: 1, 4, 256>}, {pipeline_mode = #tpu.pipeline_mode<synchronous>, transform_indices = @transform_3, window_bounds = array<i64: 12, 1>}, {pipeline_mode = #tpu.pipeline_mode<synchronous>, transform_indices = @transform_4, window_bounds = array<i64: 12, 1>}, {pipeline_mode = #tpu.pipeline_mode<synchronous>, transform_indices = @transform_5, window_bounds = array<i64: 36, 12>}, {pipeline_mode = #tpu.pipeline_mode<synchronous>, transform_indices = @transform_6, window_bounds = array<i64: 2, 256>}, {transform_indices = @transform_7, window_bounds = array<i64: 1, 4, 256>}, {transform_indices = @transform_8, window_bounds = array<i64: 1, 4, 1>}, {transform_indices = @transform_9, window_bounds = array<i64: 1, 4, 1>}]} {
    %c0 = arith.constant 0 : index
    %c0_0 = arith.constant 0 : index
    %c0_1 = arith.constant 0 : index
    %0 = vector.load %arg1[%c0, %c0_0, %c0_1] : memref<1x4x256xf32, #tpu.memory_space<vmem>>, vector<1x4x256xf32>
    %1 = vector.shape_cast %0 : vector<1x4x256xf32> to vector<4x256xf32>
    %c0_2 = arith.constant 0 : index
    %c0_3 = arith.constant 0 : index
    %2 = vector.load %arg4[%c0_2, %c0_3] : memref<12x1xf32, #tpu.memory_space<vmem>>, vector<4x1xf32>
    %3 = vector.broadcast %2 : vector<4x1xf32> to vector<4x256xf32>
    %4 = arith.mulf %1, %3 : vector<4x256xf32>
    %c0_4 = arith.constant 0 : index
    %c0_5 = arith.constant 0 : index
    %5 = vector.load %arg5[%c0_4, %c0_5] : memref<12x1xf32, #tpu.memory_space<vmem>>, vector<4x1xf32>
    %6 = vector.broadcast %5 : vector<4x1xf32> to vector<4x256xf32>
    %7 = arith.addf %4, %6 : vector<4x256xf32>
    %cst = arith.constant 0.000000e+00 : f32
    %8 = vector.broadcast %cst : f32 to vector<4x256xf32>
    %9 = arith.maximumf %7, %8 : vector<4x256xf32>
    %10 = arith.truncf %9 : vector<4x256xf32> to vector<4x256xbf16>
    %c0_6 = arith.constant 0 : index
    %c0_7 = arith.constant 0 : index
    %11 = vector.load %arg11[%c0_6, %c0_7] : memref<12x256xbf16, #tpu.memory_space<vmem>>, vector<4x256xbf16>
    tpu.vector_store %arg11[%c0_6, %c0_7], %10 {strides = array<i32>} : memref<12x256xbf16, #tpu.memory_space<vmem>>, vector<4x256xbf16>,
    %c0_8 = arith.constant 0 : index
    %c0_9 = arith.constant 0 : index
    %c0_10 = arith.constant 0 : index
    %12 = vector.load %arg2[%c0_8, %c0_9, %c0_10] : memref<1x4x256xf32, #tpu.memory_space<vmem>>, vector<1x4x256xf32>
    %13 = vector.shape_cast %12 : vector<1x4x256xf32> to vector<4x256xf32>
    %c4 = arith.constant 4 : index
    %c0_11 = arith.constant 0 : index
    %14 = vector.load %arg4[%c4, %c0_11] : memref<12x1xf32, #tpu.memory_space<vmem>>, vector<4x1xf32>
    %15 = vector.broadcast %14 : vector<4x1xf32> to vector<4x256xf32>
    %16 = arith.mulf %13, %15 : vector<4x256xf32>
    %c4_12 = arith.constant 4 : index
    %c0_13 = arith.constant 0 : index
    %17 = vector.load %arg5[%c4_12, %c0_13] : memref<12x1xf32, #tpu.memory_space<vmem>>, vector<4x1xf32>
    %18 = vector.broadcast %17 : vector<4x1xf32> to vector<4x256xf32>
    %19 = arith.addf %16, %18 : vector<4x256xf32>
    %cst_14 = arith.constant 0.000000e+00 : f32
    %20 = vector.broadcast %cst_14 : f32 to vector<4x256xf32>
    %21 = arith.maximumf %19, %20 : vector<4x256xf32>
    %22 = arith.truncf %21 : vector<4x256xf32> to vector<4x256xbf16>
    %c4_15 = arith.constant 4 : index
    %c0_16 = arith.constant 0 : index
    %23 = vector.load %arg11[%c4_15, %c0_16] : memref<12x256xbf16, #tpu.memory_space<vmem>>, vector<4x256xbf16>
    tpu.vector_store %arg11[%c4_15, %c0_16], %22 {strides = array<i32>} : memref<12x256xbf16, #tpu.memory_space<vmem>>, vector<4x256xbf16>,
    %c0_17 = arith.constant 0 : index
    %c0_18 = arith.constant 0 : index
    %c0_19 = arith.constant 0 : index
    %24 = vector.load %arg3[%c0_17, %c0_18, %c0_19] : memref<1x4x256xf32, #tpu.memory_space<vmem>>, vector<1x4x256xf32>
    %25 = vector.shape_cast %24 : vector<1x4x256xf32> to vector<4x256xf32>
    %c8 = arith.constant 8 : index
    %c0_20 = arith.constant 0 : index
    %26 = vector.load %arg4[%c8, %c0_20] : memref<12x1xf32, #tpu.memory_space<vmem>>, vector<4x1xf32>
    %27 = vector.broadcast %26 : vector<4x1xf32> to vector<4x256xf32>
    %28 = arith.mulf %25, %27 : vector<4x256xf32>
    %c8_21 = arith.constant 8 : index
    %c0_22 = arith.constant 0 : index
    %29 = vector.load %arg5[%c8_21, %c0_22] : memref<12x1xf32, #tpu.memory_space<vmem>>, vector<4x1xf32>
    %30 = vector.broadcast %29 : vector<4x1xf32> to vector<4x256xf32>
    %31 = arith.addf %28, %30 : vector<4x256xf32>
    %cst_23 = arith.constant 0.000000e+00 : f32
    %32 = vector.broadcast %cst_23 : f32 to vector<4x256xf32>
    %33 = arith.maximumf %31, %32 : vector<4x256xf32>
    %34 = arith.truncf %33 : vector<4x256xf32> to vector<4x256xbf16>
    %c8_24 = arith.constant 8 : index
    %c0_25 = arith.constant 0 : index
    %35 = vector.load %arg11[%c8_24, %c0_25] : memref<12x256xbf16, #tpu.memory_space<vmem>>, vector<4x256xbf16>
    tpu.vector_store %arg11[%c8_24, %c0_25], %34 {strides = array<i32>} : memref<12x256xbf16, #tpu.memory_space<vmem>>, vector<4x256xbf16>,
    %c0_26 = arith.constant 0 : index
    %c0_27 = arith.constant 0 : index
    %36 = vector.load %arg6[%c0_26, %c0_27] : memref<36x12xbf16, #tpu.memory_space<vmem>>, vector<36x12xbf16>
    %c0_28 = arith.constant 0 : index
    %c0_29 = arith.constant 0 : index
    %37 = vector.load %arg11[%c0_28, %c0_29] : memref<12x256xbf16, #tpu.memory_space<vmem>>, vector<12x256xbf16>
    %cst_30 = arith.constant dense<0.000000e+00> : vector<36x256xf32>
    %38 = tpu.matmul %36, %37, %cst_30 {dimension_numbers = #tpu.dot_dimension_numbers<[1], [0], [0], [1], [0, 0, 1, 1], [], []>} : vector<36x12xbf16>, vector<12x256xbf16>, vector<36x256xf32> -> vector<36x256xf32>
    %cst_31 = arith.constant 0.000000e+00 : f32
    %39 = vector.broadcast %cst_31 : f32 to vector<36x128xf32>
    %c0_32 = arith.constant 0 : index
    %c0_33 = arith.constant 0 : index
    %40 = vector.load %arg12[%c0_32, %c0_33] : memref<36x512xf32, #tpu.memory_space<vmem>>, vector<36x128xf32>
    tpu.vector_store %arg12[%c0_32, %c0_33], %39 {strides = array<i32>} : memref<36x512xf32, #tpu.memory_space<vmem>>, vector<36x128xf32>,
    %c0_34 = arith.constant 0 : index
    %c384 = arith.constant 384 : index
    %41 = vector.load %arg12[%c0_34, %c384] : memref<36x512xf32, #tpu.memory_space<vmem>>, vector<36x128xf32>
    tpu.vector_store %arg12[%c0_34, %c384], %39 {strides = array<i32>} : memref<36x512xf32, #tpu.memory_space<vmem>>, vector<36x128xf32>,
    %c0_35 = arith.constant 0 : index
    %c128 = arith.constant 128 : index
    %42 = vector.load %arg12[%c0_35, %c128] : memref<36x512xf32, #tpu.memory_space<vmem>>, vector<36x256xf32>
    tpu.vector_store %arg12[%c0_35, %c128], %38 {strides = array<i32>} : memref<36x512xf32, #tpu.memory_space<vmem>>, vector<36x256xf32>,
    %c0_36 = arith.constant 0 : index
    %c111 = arith.constant 111 : index
    %43 = vector.load %arg12[%c0_36, %c111] : memref<36x512xf32, #tpu.memory_space<vmem>>, vector<4x256xf32>
    %c0_37 = arith.constant 0 : index
    %c0_38 = arith.constant 0 : index
    %44 = vector.load %arg7[%c0_37, %c0_38] : memref<2x256xf32, #tpu.memory_space<vmem>>, vector<1x256xf32>
    %45 = vector.broadcast %44 : vector<1x256xf32> to vector<4x256xf32>
    %46 = arith.mulf %43, %45 : vector<4x256xf32>
    %c4_39 = arith.constant 4 : index
    %c112 = arith.constant 112 : index
    %47 = vector.load %arg12[%c4_39, %c112] : memref<36x512xf32, #tpu.memory_space<vmem>>, vector<4x256xf32>
    %48 = arith.addf %46, %47 : vector<4x256xf32>
    %c8_40 = arith.constant 8 : index
    %c113 = arith.constant 113 : index
    %49 = vector.load %arg12[%c8_40, %c113] : memref<36x512xf32, #tpu.memory_space<vmem>>, vector<4x256xf32>
    %c1 = arith.constant 1 : index
    %c0_41 = arith.constant 0 : index
    %50 = vector.load %arg7[%c1, %c0_41] : memref<2x256xf32, #tpu.memory_space<vmem>>, vector<1x256xf32>
    %51 = vector.broadcast %50 : vector<1x256xf32> to vector<4x256xf32>
    %52 = arith.mulf %49, %51 : vector<4x256xf32>
    %53 = arith.addf %48, %52 : vector<4x256xf32>
    %c12 = arith.constant 12 : index
    %c127 = arith.constant 127 : index
    %54 = vector.load %arg12[%c12, %c127] : memref<36x512xf32, #tpu.memory_space<vmem>>, vector<4x256xf32>
    %c0_42 = arith.constant 0 : index
    %c0_43 = arith.constant 0 : index
    %55 = vector.load %arg7[%c0_42, %c0_43] : memref<2x256xf32, #tpu.memory_space<vmem>>, vector<1x256xf32>
    %56 = vector.broadcast %55 : vector<1x256xf32> to vector<4x256xf32>
    %57 = arith.mulf %54, %56 : vector<4x256xf32>
    %58 = arith.addf %53, %57 : vector<4x256xf32>
    %c16 = arith.constant 16 : index
    %c128_44 = arith.constant 128 : index
    %59 = vector.load %arg12[%c16, %c128_44] : memref<36x512xf32, #tpu.memory_space<vmem>>, vector<4x256xf32>
    %60 = arith.addf %58, %59 : vector<4x256xf32>
    %c20 = arith.constant 20 : index
    %c129 = arith.constant 129 : index
    %61 = vector.load %arg12[%c20, %c129] : memref<36x512xf32, #tpu.memory_space<vmem>>, vector<4x256xf32>
    %c1_45 = arith.constant 1 : index
    %c0_46 = arith.constant 0 : index
    %62 = vector.load %arg7[%c1_45, %c0_46] : memref<2x256xf32, #tpu.memory_space<vmem>>, vector<1x256xf32>
    %63 = vector.broadcast %62 : vector<1x256xf32> to vector<4x256xf32>
    %64 = arith.mulf %61, %63 : vector<4x256xf32>
    %65 = arith.addf %60, %64 : vector<4x256xf32>
    %c24 = arith.constant 24 : index
    %c143 = arith.constant 143 : index
    %66 = vector.load %arg12[%c24, %c143] : memref<36x512xf32, #tpu.memory_space<vmem>>, vector<4x256xf32>
    %c0_47 = arith.constant 0 : index
    %c0_48 = arith.constant 0 : index
    %67 = vector.load %arg7[%c0_47, %c0_48] : memref<2x256xf32, #tpu.memory_space<vmem>>, vector<1x256xf32>
    %68 = vector.broadcast %67 : vector<1x256xf32> to vector<4x256xf32>
    %69 = arith.mulf %66, %68 : vector<4x256xf32>
    %70 = arith.addf %65, %69 : vector<4x256xf32>
    %c28 = arith.constant 28 : index
    %c144 = arith.constant 144 : index
    %71 = vector.load %arg12[%c28, %c144] : memref<36x512xf32, #tpu.memory_space<vmem>>, vector<4x256xf32>
    %72 = arith.addf %70, %71 : vector<4x256xf32>
    %c32 = arith.constant 32 : index
    %c145 = arith.constant 145 : index
    %73 = vector.load %arg12[%c32, %c145] : memref<36x512xf32, #tpu.memory_space<vmem>>, vector<4x256xf32>
    %c1_49 = arith.constant 1 : index
    %c0_50 = arith.constant 0 : index
    %74 = vector.load %arg7[%c1_49, %c0_50] : memref<2x256xf32, #tpu.memory_space<vmem>>, vector<1x256xf32>
    %75 = vector.broadcast %74 : vector<1x256xf32> to vector<4x256xf32>
    %76 = arith.mulf %73, %75 : vector<4x256xf32>
    %77 = arith.addf %72, %76 : vector<4x256xf32>
    %c0_51 = arith.constant 0 : index
    %c0_52 = arith.constant 0 : index
    %c0_53 = arith.constant 0 : index
    %78 = vector.load %arg8[%c0_51, %c0_52, %c0_53] : memref<1x4x256xf32, #tpu.memory_space<vmem>>, vector<1x4x256xf32>
    %79 = vector.shape_cast %78 : vector<1x4x256xf32> to vector<4x256xf32>
    %80 = vector.shape_cast %77 : vector<4x256xf32> to vector<1x4x256xf32>
    tpu.vector_store %arg8[%c0_51, %c0_52, %c0_53], %80 {strides = array<i32>} : memref<1x4x256xf32, #tpu.memory_space<vmem>>, vector<1x4x256xf32>,
    %cst_54 = arith.constant dense<0.000000e+00> : vector<4xf32>
    %81 = vector.multi_reduction <add>, %77, %cst_54 [1] : vector<4x256xf32> to vector<4xf32>
    %82 = vector.shape_cast %81 : vector<4xf32> to vector<4x1xf32>
    %c0_55 = arith.constant 0 : index
    %c0_56 = arith.constant 0 : index
    %c0_57 = arith.constant 0 : index
    %83 = vector.load %arg9[%c0_55, %c0_56, %c0_57] : memref<1x4x1xf32, #tpu.memory_space<vmem>>, vector<1x4x1xf32>
    %84 = vector.shape_cast %83 : vector<1x4x1xf32> to vector<4x1xf32>
    %85 = vector.shape_cast %82 : vector<4x1xf32> to vector<1x4x1xf32>
    tpu.vector_store %arg9[%c0_55, %c0_56, %c0_57], %85 {strides = array<i32>} : memref<1x4x1xf32, #tpu.memory_space<vmem>>, vector<1x4x1xf32>,
    %86 = arith.mulf %77, %77 : vector<4x256xf32>
    %cst_58 = arith.constant dense<0.000000e+00> : vector<4xf32>
    %87 = vector.multi_reduction <add>, %86, %cst_58 [1] : vector<4x256xf32> to vector<4xf32>
    %88 = vector.shape_cast %87 : vector<4xf32> to vector<4x1xf32>
    %c0_59 = arith.constant 0 : index
    %c0_60 = arith.constant 0 : index
    %c0_61 = arith.constant 0 : index
    %89 = vector.load %arg10[%c0_59, %c0_60, %c0_61] : memref<1x4x1xf32, #tpu.memory_space<vmem>>, vector<1x4x1xf32>
    %90 = vector.shape_cast %89 : vector<1x4x1xf32> to vector<4x1xf32>
    %91 = vector.shape_cast %88 : vector<4x1xf32> to vector<1x4x1xf32>
    tpu.vector_store %arg10[%c0_59, %c0_60, %c0_61], %91 {strides = array<i32>} : memref<1x4x1xf32, #tpu.memory_space<vmem>>, vector<1x4x1xf32>,
    return
  }
  func.func @transform_0(%arg0: i32) -> (i32, i32, i32) {
    %c0_i32 = arith.constant 0 : i32
    %c0_i32_0 = arith.constant 0 : i32
    %c0_i32_1 = arith.constant 0 : i32
    return %arg0, %c0_i32, %c0_i32_0 : i32, i32, i32
  }
  func.func @transform_1(%arg0: i32) -> (i32, i32, i32) {
    %c0_i32 = arith.constant 0 : i32
    %c0_i32_0 = arith.constant 0 : i32
    %c0_i32_1 = arith.constant 0 : i32
    return %arg0, %c0_i32, %c0_i32_0 : i32, i32, i32
  }
  func.func @transform_2(%arg0: i32) -> (i32, i32, i32) {
    %c0_i32 = arith.constant 0 : i32
    %c0_i32_0 = arith.constant 0 : i32
    %c0_i32_1 = arith.constant 0 : i32
    return %arg0, %c0_i32, %c0_i32_0 : i32, i32, i32
  }
  func.func @transform_3(%arg0: i32) -> (i32, i32) {
    %c0_i32 = arith.constant 0 : i32
    %c0_i32_0 = arith.constant 0 : i32
    %c0_i32_1 = arith.constant 0 : i32
    return %c0_i32, %c0_i32_0 : i32, i32
  }
  func.func @transform_4(%arg0: i32) -> (i32, i32) {
    %c0_i32 = arith.constant 0 : i32
    %c0_i32_0 = arith.constant 0 : i32
    %c0_i32_1 = arith.constant 0 : i32
    return %c0_i32, %c0_i32_0 : i32, i32
  }
  func.func @transform_5(%arg0: i32) -> (i32, i32) {
    %c0_i32 = arith.constant 0 : i32
    %c0_i32_0 = arith.constant 0 : i32
    %c0_i32_1 = arith.constant 0 : i32
    return %c0_i32, %c0_i32_0 : i32, i32
  }
  func.func @transform_6(%arg0: i32) -> (i32, i32) {
    %c0_i32 = arith.constant 0 : i32
    %c0_i32_0 = arith.constant 0 : i32
    %c0_i32_1 = arith.constant 0 : i32
    return %c0_i32, %c0_i32_0 : i32, i32
  }
  func.func @transform_7(%arg0: i32) -> (i32, i32, i32) {
    %c0_i32 = arith.constant 0 : i32
    %c0_i32_0 = arith.constant 0 : i32
    %c0_i32_1 = arith.constant 0 : i32
    return %arg0, %c0_i32, %c0_i32_0 : i32, i32, i32
  }
  func.func @transform_8(%arg0: i32) -> (i32, i32, i32) {
    %c0_i32 = arith.constant 0 : i32
    %c0_i32_0 = arith.constant 0 : i32
    %c0_i32_1 = arith.constant 0 : i32
    return %arg0, %c0_i32, %c0_i32_0 : i32, i32, i32
  }
  func.func @transform_9(%arg0: i32) -> (i32, i32, i32) {
    %c0_i32 = arith.constant 0 : i32
    %c0_i32_0 = arith.constant 0 : i32
    %c0_i32_1 = arith.constant 0 : i32
    return %arg0, %c0_i32, %c0_i32_0 : i32, i32, i32
  }
}

</mosaic_0001>

<bundles_post_ra>
// kernel: dense_block_forward.4
= control target key start
LH: loop header
LB: loop body
LE: loop exit
PB: predicated region body
PF: predicated region fallthrough
CT: control target
= control target key end

     0   :  { %s303_s9 = smov 0   ;;  %s323_s0 = inlined_call_operand.vmem [shape: f32[2,4,256], index: 0, kind: input, shape index: {}]   ;;  %s324_s1 = inlined_call_operand.vmem [shape: f32[2,4,1], index: 1, kind: output, shape index: {0}]   ;;  %s325_s2 = inlined_call_operand.vmem [shape: f32[2,4,1], index: 2, kind: output, shape index: {1}]  }
   0x1 LB: > { %s259_s10 = sadd.s32 4294967295, %s286_s9   ;;  %p263_p0 = scmp.ge.s32.totalorder %s286_s9, 1  ;;  %s286_s9 = sphi %s303_s9, %s13_s9  }
   0x2   : > { %p115_p1 = scmp.lt.s32.totalorder %s286_s9, 3 }
   0x4   : > { %p116_p2 = pnand %p263_p0, %p115_p1 }
   0x5   : > { %p140_p3 = scmp.lt.s32.totalorder (!%p116_p2), %s259_s10, 1  ;;  %vm157_vm0 = vcmask (!%p116_p2), 1043456   ;;  %vm163_vm1 = vcmask (!%p116_p2), 3072  }
   0x6   : > { %119 = sbr.rel (%p116_p2) target bundleno = 169 (0xa9), region = 24 }
   0xd   : > { %s327_s10 = smov (!%p140_p3, %s259_s10), 1 }
   0xe   : > { %s270_s11 = sshll.u32 %s327_s10, 3  ;;  %s266_s15 = sshll.u32 %s327_s10, 2 }
   0xf   : > { %s144_s14 = scalar_lea.vmem %s323_s0, %s270_s11  ;;  %s148_s18 = scalar_lea.vmem %s324_s1, %s266_s15 }
  0x10   : > { %v153_v0 = vld [vmem:[%s144_s14] sm:$0xff]  ;;  %s152_s21 = scalar_lea.vmem %s325_s2, %s266_s15 }
  0x11   : > { %v155_v1 = vcombine.high %v153_v0, %v153_v0  ;;  %v158_v2 = vsel %vm157_vm0, %v153_v0, 0.0  ;;  %v165_v3 = vmul.f32 %v153_v0, %v153_v0 }
  0x13   : > { %v159_v4 = vsel %vm157_vm0, %v155_v1, 0.0  ;;  %v167_v5 = vcombine.high %v165_v3, %v165_v3  ;;  %v169_v6 = vsel %vm157_vm0, %v165_v3, 0.0 }
  0x14   : > { %v160_v7 = vadd.f32 %v159_v4, %v158_v2 }
  0x15   : > { %v170_v8 = vsel %vm157_vm0, %v167_v5, 0.0 }
  0x16   : > { %161 = vadd.xlane.f32.xlu0 %v160_v7  ;;  %v171_v9 = vadd.f32 %v170_v8, %v169_v6 }
  0x1a   : > { %172 = vadd.xlane.f32.xlu0 %v171_v9 }
  0xa3   : > { %v162_v10 = vpop.xlane.xlu0 %161 }
  0xa4   : > { %164 = vst.msk [vmem:[%s148_s18] sm:$0xf] %vm163_vm1, %v162_v10 }
  0xa7   : > { %v173_v11 = vpop.xlane.xlu0 %172 }
  0xa8   : > { %174 = vst.msk [vmem:[%s152_s21] sm:$0xf] %vm163_vm1, %v173_v11 }
  0xa9 PF: > { %s13_s9 = sadd.s32 1, %s286_s9  }
  0xaa   : > { %p10_p4 = scmp.ge.s32.totalorder %s13_s9, 4  }
  0xac   :  { %12 = sbr.rel (!%p10_p4) target bundleno = 1 (0x1), region = 66 }

// kernel: dense_block_forward.6
= control target key start
LH: loop header
LB: loop body
LE: loop exit
PB: predicated region body
PF: predicated region fallthrough
CT: control target
= control target key end

     0   :  { %s1136_s27 = smov 0   ;;  %s1280_s0 = inlined_call_operand.vmem [shape: f32[2,4,256], index: 0, kind: input, shape index: {}]   ;;  %s1281_s1 = inlined_call_operand.vmem [shape: f32[2,4,256], index: 1, kind: input, shape index: {}]   ;;  %s1282_s2 = inlined_call_operand.vmem [shape: f32[8,1], index: 2, kind: input, shape index: {}]   ;;  %s1283_s3 = inlined_call_operand.vmem [shape: f32[8,1], index: 3, kind: input, shape index: {}]   ;;  %s1284_s4 = inlined_call_operand.vmem [shape: bf16[36,8], index: 4, kind: input, shape index: {}]   ;;  %s1285_s5 = inlined_call_operand.vmem [shape: f32[2,256], index: 5, kind: input, shape index: {}]   ;;  %s1286_s6 = inlined_call_operand.vmem [shape: f32[2,4,256], index: 6, kind: output, shape index: {0}]   ;;  %s1287_s7 = inlined_call_operand.vmem [shape: f32[2,4,1], index: 7, kind: output, shape index: {1}]   ;;  %s1288_s8 = inlined_call_operand.vmem [shape: f32[2,4,1], index: 8, kind: output, shape index: {2}]  }
   0x1 LB: > { %s1004_s28 = sadd.s32 4294967295, %s1074_s27   ;;  %p1008_p0 = scmp.ge.s32.totalorder %s1074_s27, 1  ;;  %s1074_s27 = sphi %s1136_s27, %s19_s27  }
   0x2   : > { %p277_p1 = scmp.lt.s32.totalorder %s1074_s27, 3 }
   0x4   : > { %p278_p2 = pnand %p1008_p0, %p277_p1 }
   0x5   : > { %v405_v0 = vld [vmem:[%s1283_s3 + $0x4] sm:$0xf] (!%p278_p2)  ;;  %v1076_v2 = vmov (!%p278_p2), 0   ;;  %v363_v3 = vld [vmem:[%s1283_s3] sm:$0xf] (!%p278_p2)  ;;  %v357_v5 = vlaneseq (!%p278_p2)  ;;  %v1077_v13 = vmov (!%p278_p2), 0.0  }
   0x6   : > { %281 = sbr.rel (%p278_p2) target bundleno = 814 (0x32e), region = 44  ;;  %v391_v1 = vld [vmem:[%s1282_s2 + $0x4] sm:$0xf] (!%p278_p2)  ;;  %1062 = vset.pattern.permute.xlu1 (!%p278_p2), %v1076_v2  ;;  %1061 = vset.pattern.permute.xlu0 (!%p278_p2), %v1076_v2  ;;  %v349_v4 = vld [vmem:[%s1282_s2] sm:$0xf] (!%p278_p2)  ;;  %536 = vst [vmem:[#allocation3 + $0x20] sm:$0xff] (!%p278_p2), %v1077_v13 }
   0x7   : > { %408 = vperm.xlu1 (!%p278_p2), %1062, %v405_v0   ;;  %394 = vperm.xlu0 (!%p278_p2), %1061, %v391_v1   ;;  %v358_v6 = vshrl.u32 (!%p278_p2), %v357_v5, 7  ;;  %v1028_v8 = vld [vmem:[%s1285_s5 + $0x1] ss:$2 sm:$0x3] (!%p278_p2)  ;;  %535 = vst [vmem:[#allocation3] sm:$0xff] (!%p278_p2), %v1077_v13  ;;  %542 = vst [vmem:[#allocation3 + $0x58] sm:$0xff] (!%p278_p2), %v1077_v13 }
   0x8   : > { %506 = vmatprep.mubr.bf16.mxu0 (!%p278_p2), %v1076_v2  ;;  %516 = vmatprep.mubr.bf16.mxu1 (!%p278_p2), %v1076_v2  ;;  %v558_v10 = vld [vmem:[%s1285_s5] ss:$2 sm:$0x3] (!%p278_p2)  ;;  %543 = vst [vmem:[#allocation3 + $0x78] sm:$0xff] (!%p278_p2), %v1077_v13  ;;  %544 = vst [vmem:[#allocation3 + $0x98] sm:$0xf] (!%p278_p2), %v1077_v13 }
   0x9   : > { %v566_v7 = vsub.s32 (!%p278_p2), 1, %v358_v6  ;;  %v562_v9 = vsub.s32 (!%p278_p2), 0, %v358_v6  ;;  %s1078_s19 = smov (!%p278_p2), 113   ;;  %s1079_s20 = smov (!%p278_p2), 127   ;;  %v1084_v18 = vmov (!%p278_p2), 839922192  }
   0xa   : > { %s1080_s21 = smov (!%p278_p2), 1   ;;  %s1081_s22 = smov (!%p278_p2), 15   ;;  %v355_v19 = vunpack.c.l.s4 (!%p278_p2), %v1084_v18  ;;  %vm467_vm0 = vcmask (!%p278_p2), 1043456   ;;  %v1065_v47 = vld [vmem:[%s1284_s4] sm:$0xff] (!%p278_p2)   ;;  %v1066_v48 = vld [vmem:[%s1284_s4 + $0x8] sm:$0xff] (!%p278_p2)   ;;  %vm457_vm1 = vcmask (!%p278_p2), 64512  }
   0xb   : > { %366 = vperm.xlu1 (!%p278_p2), %1062, %v363_v3   ;;  %352 = vperm.xlu0 (!%p278_p2), %1061, %v349_v4   ;;  %v617_v11 = vrot.slane (!%p278_p2), %v1028_v8, %v566_v7  ;;  %v613_v12 = vrot.slane (!%p278_p2), %v1028_v8, %v562_v9  ;;  %v567_v14 = vrot.slane (!%p278_p2), %v558_v10, %v566_v7  ;;  %s1082_s23 = smov (!%p278_p2), 17   ;;  %s1083_s24 = smov (!%p278_p2), 111   ;;  %v1067_v54 = vld [vmem:[%s1284_s4 + $0x10] ss:$0 sps:$4 sm:$0x33] (!%p278_p2)   ;;  %vm622_vm2 = vcmask (!%p278_p2), 924672  }
   0xc   : > { %v563_v15 = vrot.slane (!%p278_p2), %v558_v10, %v562_v9  ;;  %p324_p3 = scmp.lt.s32.totalorder (!%p278_p2), %s1004_s28, 1  ;;  %v356_v20 = vunpack.c.0.s8 (!%p278_p2), %v355_v19  ;;  %s1085_s16 = smov (!%p278_p2), 126   ;;  %vm705_vm3 = vcmask (!%p278_p2), 7168   ;;  %vm595_vm4 = vcmask (!%p278_p2), 1039360  }
   0xd   : > { %v604_v49 = vld [vmem:[#allocation3 + $0x20] sm:$0xf]  ;;  %v648_v59 = vld [vmem:[#allocation3 + $0x20] sm:$0xf0]  ;;  %vm741_vm5 = vcmask 121856   ;;  %vm798_vm6 = vcmask 138240  }
   0xe   : > { %v580_v16 = vld [vmem:[#allocation3] sm:$0xf0]  ;;  %s1290_s28 = smov (!%p324_p3, %s1004_s28), 1  ;;  %v359_v21 = vsub.s32 %v356_v20, %v358_v6  ;;  %v700_v55 = vld [vmem:[#allocation3 + $0x58] sm:$0xf0]  ;;  %vm572_vm7 = vcmask 908288  }
   0xf   : > { %620 = vrot.lane.b32.xlu1 %v617_v11, %s1078_s19  ;;  %618 = vrot.lane.b32.xlu0 %v613_v12, %s1078_s19  ;;  %v586_v17 = vrot.slane %v580_v16, 4  ;;  %s1180_s25 = sshll.u32 %s1290_s28, 3  ;;  %s1086_s19 = smov 110   ;;  %v736_v60 = vld [vmem:[#allocation3 + $0x78] sm:$0xf]  ;;  %vm639_vm8 = vcmask 1031168  }
  0x10   : > { %s333_s30 = scalar_lea.vmem %s1281_s1, %s1180_s25  ;;  %s328_s11 = scalar_lea.vmem %s1280_s0, %s1180_s25  ;;  %vm674_vm9 = vcmask 916480   ;;  %vm725_vm10 = vcmask 900096   ;;  %vm758_vm11 = vcmask 785408   ;;  %vm782_vm12 = vcmask 777216  }
  0x11   : > { %v390_v24 = vld [vmem:[%s333_s30] sm:$0xff]  ;;  %vm815_vm13 = vcmask 769024   ;;  %s1015_s26 = sshll.u32 %s1290_s28, 2  ;;  %vm851_vm14 = vcmask 3072   ;;  %s338_s28 = scalar_lea.vmem %s1286_s6, %s1180_s25 }
  0x12   : > { %v348_v30 = vld [vmem:[%s328_s11] sm:$0xff]  ;;  %s342_s9 = scalar_lea.vmem %s1287_s7, %s1015_s26  ;;  %s346_s12 = scalar_lea.vmem %s1288_s8, %s1015_s26 }
  0x13   : > { %653 = vrot.lane.b32.xlu1 %v567_v14, %s1079_s20  ;;  %651 = vrot.lane.b32.xlu0 %v563_v15, %s1079_s20 }
  0x17   : > { %703 = vrot.lane.b32.xlu1 %v617_v11, %s1080_s21  ;;  %701 = vrot.lane.b32.xlu0 %v613_v12, %s1080_s21  ;;  %s1087_s21 = smov 96  }
  0x1b   : > { %739 = vrot.lane.b32.xlu1 %v567_v14, %s1081_s22  ;;  %737 = vrot.lane.b32.xlu0 %v563_v15, %s1081_s22  ;;  %s1088_s22 = smov 112  }
  0x1f   : > { %796 = vrot.lane.b32.xlu1 %v617_v11, %s1082_s23  ;;  %794 = vrot.lane.b32.xlu0 %v613_v12, %s1082_s23 }
  0x23   : > { %570 = vrot.lane.b32.xlu1 %v567_v14, %s1083_s24  ;;  %568 = vrot.lane.b32.xlu0 %v563_v15, %s1083_s24 }
  0x27   : > { %589 = vrot.lane.b32.xlu0 %v586_v17, %s1079_s20 }
  0x86   : > { %v409_v22 = vpop.permute.xlu1 %408  ;;  %v395_v23 = vpop.permute.xlu0 %394 }
  0x87   : > { %v416_v25 = vrot.slane %v409_v22, %v359_v21  ;;  %v402_v26 = vrot.slane %v395_v23, %v359_v21 }
  0x89   : > { %v404_v27 = vmul.f32 %v402_v26, %v390_v24 }
  0x8a   : > { %v367_v28 = vpop.permute.xlu1 %366  ;;  %v353_v29 = vpop.permute.xlu0 %352 }
  0x8b   : > { %v418_v31 = vadd.f32 %v416_v25, %v404_v27  ;;  %v360_v32 = vrot.slane %v353_v29, %v359_v21  ;;  %v374_v34 = vrot.slane %v367_v28, %v359_v21 }
  0x8d   : > { %v419_v33 = vmax.f32 %v418_v31, 0.0  ;;  %v362_v35 = vmul.f32 %v360_v32, %v348_v30 }
  0x8e   : > { %v1199_v50 = vpop.permute.xlu1 %620  ;;  %v1201_v51 = vpop.permute.xlu0 %618 }
  0x8f   : > { %v421_v36 = vcombine.high %v419_v33, %v419_v33  ;;  %v376_v37 = vadd.f32 %v374_v34, %v362_v35  ;;  %v627_v52 = vmul.f32 %v1201_v51, %v604_v49  ;;  %v623_v24 = vsel %vm622_vm2, %v1201_v51, %v1199_v50 }
  0x91   : > { %v1035_v38 = vpack.c.bf16 %v421_v36, %v419_v33  ;;  %v377_v39 = vmax.f32 %v376_v37, 0.0  ;;  %633 = vrot.lane.b32.xlu1 %v627_v52, %s1085_s16 }
  0x92   : > { %v1206_v53 = vpop.permute.xlu1 %653  ;;  %v1217_v62 = vpop.permute.xlu0 %651 }
  0x93   : > { %v430_v40 = vrot.slane %v1035_v38, 6  ;;  %v379_v41 = vcombine.high %v377_v39, %v377_v39  ;;  %v659_v63 = vmul.f32 %v1217_v62, %v648_v59  ;;  %v655_v38 = vsel %vm595_vm4, %v1217_v62, %v1206_v53 }
  0x95   : > { %432 = vst [vmem:[#allocation2] sm:$0xcc] %v430_v40  ;;  %v1034_v42 = vpack.c.bf16 %v379_v41, %v377_v39  ;;  %v665_v1 = vrot.slane %v659_v63, 4 }
  0x96   : > { %v1211_v56 = vpop.permute.xlu1 %703  ;;  %v702_v15 = vpop.permute.xlu0 %701 }
  0x97   : > { %389 = vst [vmem:[#allocation2] sm:$0x33] %v1034_v42  ;;  %v712_v57 = vmul.f32 %v1211_v56, %v700_v55  ;;  %v706_v30 = vsel %vm705_vm3, %v702_v15, %v1211_v56  ;;  %v793_v55 = vld [vmem:[#allocation3 + $0x98] sm:$0xf] }
  0x99   : > { %v718_v58 = vrot.slane %v712_v57, 4 }
  0x9a   : > { %v1215_v61 = vpop.permute.xlu1 %739  ;;  %v738_v31 = vpop.permute.xlu0 %737 }
  0x9b   : > { %723 = vrot.lane.b32.xlu1 %v718_v58, %s1086_s19  ;;  %v748_v0 = vmul.f32 %v1215_v61, %v736_v60  ;;  %v742_v39 = vsel %vm741_vm5, %v738_v31, %v1215_v61 }
  0x9d   : > { %756 = vrot.lane.b32.xlu0 %v748_v0, %s1087_s21 }
  0x9e   : > { %v438_v43 = vld [vmem:[#allocation2] sm:$0xff]  ;;  %v795_v52 = vpop.permute.xlu0 %794  ;;  %v797_v56 = vpop.permute.xlu1 %796 }
  0x9f   : > { %v1023_v44 = vcombine.high %v438_v43, %v438_v43  ;;  %v1022_v45 = vcombine.low %v438_v43, %v438_v43  ;;  %v799_v57 = vsel %vm798_vm6, %v795_v52, %v797_v56  ;;  %v805_v59 = vmul.f32 %v797_v56, %v793_v55 }
  0xa1   : > { %1024 = vmatprep.subr.msk.bf16.mxu0 %vm467_vm0, %v1023_v44  ;;  %1036 = vmatprep.subr.msk.bf16.mxu1 %vm467_vm0, %v1023_v44  ;;  %v469_v46 = vsel %vm467_vm0, %v1022_v45, 0 }
  0xa2   : > { %475 = vmatpush1.bf16.msra.mxu0 %v469_v46  ;;  %1037 = vmatpush1.bf16.msra.mxu1 %v469_v46  ;;  %v569_v61 = vpop.permute.xlu0 %568  ;;  %v571_v63 = vpop.permute.xlu1 %570 }
  0xa3   : > { %668 = vrot.lane.b32.xlu0 %v665_v1, %s1088_s22 }
  0xa5   : > { %1025 = vmatmul.mubr.msk.bf16.vlgmr.msra.gmra.mrb[0].mxu0 %vm457_vm1, %v1065_v47  ;;  %1026 = vmatmul.mubr.msk.bf16.vlgmr.msra.gmra.mrb[0].mxu1 %vm457_vm1, %v1066_v48  ;;  %v769_v48 = vld [vmem:[#allocation3 + $0x78] sm:$0xf0] }
  0xa6   : > { %526 = vmatprep.mubr.bf16.mxu1 %v1076_v2  ;;  %v590_v62 = vpop.permute.xlu0 %589 }
  0xad   : > { %1027 = vmatmul.mubr.msk.bf16.gmra.mrb[4].mxu1 %vm457_vm1, %v1067_v54 }
 0x103   : > { %v634_v1 = vpop.permute.xlu1 %633 }
 0x10f   : > { %v757_v0 = vpop.permute.xlu0 %756 }
 0x178   : > { %v508_v2 = vpop.f32.mrb[0].mxu0  ;;  %v518_v3 = vpop.f32.mrb[0].mxu1 }
 0x179   : > { %545 = vst [vmem:[#allocation3 + $0x8] sm:$0xff] %v508_v2  ;;  %549 = vst [vmem:[#allocation3 + $0x48] sm:$0xff] %v518_v3  ;;  %v510_v4 = vpop.f32.mrb[1].mxu0  ;;  %v520_v5 = vpop.f32.mrb[1].mxu1 }
 0x17a   : > { %546 = vst [vmem:[#allocation3 + $0x10] sm:$0xff] %v510_v4  ;;  %550 = vst [vmem:[#allocation3 + $0x50] sm:$0xff] %v520_v5  ;;  %v512_v6 = vpop.f32.mrb[2].mxu0  ;;  %v522_v7 = vpop.f32.mrb[2].mxu1 }
 0x17b   : > { %547 = vst [vmem:[#allocation3 + $0x28] sm:$0xff] %v512_v6  ;;  %551 = vst [vmem:[#allocation3 + $0x68] sm:$0xff] %v522_v7  ;;  %v514_v8 = vpop.f32.mrb[3].mxu0  ;;  %v524_v9 = vpop.f32.mrb[3].mxu1 }
 0x17c   : > { %548 = vst [vmem:[#allocation3 + $0x30] sm:$0xff] %v514_v8  ;;  %552 = vst [vmem:[#allocation3 + $0x70] sm:$0xff] %v524_v9  ;;  %v669_v2 = vpop.permute.xlu0 %668  ;;  %v724_v3 = vpop.permute.xlu1 %723 }
 0x180   : > { %v683_v10 = vld [vmem:[#allocation3 + $0x48] sm:$0xf]  ;;  %v581_v11 = vld [vmem:[#allocation3 + $0x8] sm:$0xf0]  ;;  %v528_v14 = vpop.f32.mrb[4].mxu1 }
 0x181   : > { %687 = vrot.lane.b32.xlu1 %v683_v10, %s1083_s24  ;;  %v684_v12 = vld [vmem:[#allocation3 + $0x50] sm:$0xf]  ;;  %v587_v13 = vrot.slane %v581_v11, 4  ;;  %v582_v16 = vld [vmem:[#allocation3 + $0x10] sm:$0xf0]  ;;  %v530_v20 = vpop.f32.mrb[5].mxu1 }
 0x182   : > { %689 = vrot.lane.b32.xlu0 %v684_v12, %s1083_s24  ;;  %v698_v17 = vld [vmem:[#allocation3 + $0x48] sm:$0xf0]  ;;  %553 = vst [vmem:[#allocation3 + $0x88] sm:$0xf] %v528_v14  ;;  %v588_v18 = vrot.slane %v582_v16, 4  ;;  %v532_v21 = vpop.f32.mrb[6].mxu1 }
 0x183   : > { %v710_v19 = vmul.f32 %v702_v15, %v698_v17  ;;  %554 = vst [vmem:[#allocation3 + $0x90] sm:$0xf] %v530_v20  ;;  %v605_v22 = vld [vmem:[#allocation3 + $0x28] sm:$0xf]  ;;  %v533_v23 = vpop.f32.mrb[7].mxu1  ;;  %s1090_s24 = smov 94   ;;  %v573_v15 = vsel %vm572_vm7, %v569_v61, %v571_v63 }
 0x184   : > { %v628_v26 = vmul.f32 %v623_v24, %v605_v22  ;;  %v606_v27 = vld [vmem:[#allocation3 + $0x30] sm:$0xf]  ;;  %v734_v28 = vld [vmem:[#allocation3 + $0x68] sm:$0xf]  ;;  %v699_v29 = vld [vmem:[#allocation3 + $0x50] sm:$0xf0] }
 0x185   : > { %591 = vrot.lane.b32.xlu1 %v587_v13, %s1079_s20  ;;  %v716_v25 = vrot.slane %v710_v19, 4  ;;  %v629_v32 = vmul.f32 %v1199_v50, %v606_v27  ;;  %v746_v33 = vmul.f32 %v738_v31, %v734_v28  ;;  %v735_v34 = vld [vmem:[#allocation3 + $0x70] sm:$0xf]  ;;  %v711_v35 = vmul.f32 %v706_v30, %v699_v29  ;;  %v649_v36 = vld [vmem:[#allocation3 + $0x28] sm:$0xf0] }
 0x186   : > { %593 = vrot.lane.b32.xlu0 %v588_v18, %s1079_s20  ;;  %v650_v37 = vld [vmem:[#allocation3 + $0x30] sm:$0xf0]  ;;  %v747_v40 = vmul.f32 %v742_v39, %v735_v34  ;;  %v660_v41 = vmul.f32 %v655_v38, %v649_v36  ;;  %v767_v46 = vld [vmem:[#allocation3 + $0x68] sm:$0xf0]  ;;  %s1089_s20 = smov 95  }
 0x187   : > { %v717_v42 = vrot.slane %v711_v35, 4  ;;  %v661_v43 = vmul.f32 %v1206_v53, %v650_v37  ;;  %v768_v47 = vld [vmem:[#allocation3 + $0x70] sm:$0xf0]  ;;  %v773_v49 = vrot.slane %v767_v46, 4  ;;  %v775_v53 = vrot.slane %v769_v48, 4 }
 0x188   : > { %v666_v44 = vrot.slane %v660_v41, 4  ;;  %v774_v51 = vrot.slane %v768_v47, 4  ;;  %v557_v11 = vld [vmem:[#allocation3 + $0x10] sm:$0xf]  ;;  %v555_v12 = vld [vmem:[#allocation3] sm:$0xf] }
 0x189   : > { %719 = vrot.lane.b32.xlu1 %v716_v25, %s1086_s19  ;;  %v667_v45 = vrot.slane %v661_v43, 4  ;;  %v791_v50 = vld [vmem:[#allocation3 + $0x88] sm:$0xf]  ;;  %v579_v17 = vmul.f32 %v571_v63, %v557_v11  ;;  %v577_v18 = vmul.f32 %v569_v61, %v555_v12 }
 0x18a   : > { %635 = vrot.lane.b32.xlu0 %v628_v26, %s1085_s16  ;;  %v803_v54 = vmul.f32 %v795_v52, %v791_v50  ;;  %v792_v58 = vld [vmem:[#allocation3 + $0x90] sm:$0xf]  ;;  %v556_v14 = vld [vmem:[#allocation3 + $0x8] sm:$0xf] }
 0x18b   : > { %v804_v60 = vmul.f32 %v799_v57, %v792_v58  ;;  %v578_v21 = vmul.f32 %v573_v15, %v556_v14 }
 0x18d   : > { %637 = vrot.lane.b32.xlu1 %v629_v32, %s1085_s16 }
 0x18e   : > { %752 = vrot.lane.b32.xlu0 %v746_v33, %s1087_s21 }
 0x191   : > { %754 = vrot.lane.b32.xlu1 %v747_v40, %s1087_s21 }
 0x192   : > { %721 = vrot.lane.b32.xlu0 %v717_v42, %s1086_s19 }
 0x195   : > { %670 = vrot.lane.b32.xlu1 %v666_v44, %s1088_s22 }
 0x196   : > { %672 = vrot.lane.b32.xlu0 %v667_v45, %s1088_s22 }
 0x199   : > { %776 = vrot.lane.b32.xlu1 %v773_v49, %s1089_s20 }
 0x19a   : > { %778 = vrot.lane.b32.xlu0 %v774_v51, %s1089_s20 }
 0x19d   : > { %780 = vrot.lane.b32.xlu1 %v775_v53, %s1089_s20 }
 0x19e   : > { %809 = vrot.lane.b32.xlu0 %v803_v54, %s1090_s24 }
 0x1a1   : > { %811 = vrot.lane.b32.xlu1 %v804_v60, %s1090_s24 }
 0x1a2   : > { %813 = vrot.lane.b32.xlu0 %v805_v59, %s1090_s24 }
 0x1f3   : > { %v688_v4 = vpop.permute.xlu1 %687 }
 0x1f4   : > { %v690_v5 = vpop.permute.xlu0 %689 }
 0x1f5   : > { %v691_v38 = vsel %vm572_vm7, %v688_v4, %v690_v5 }
 0x1f7   : > { %v592_v6 = vpop.permute.xlu1 %591 }
 0x1f8   : > { %v594_v7 = vpop.permute.xlu0 %593  ;;  %v596_v16 = vsel %vm595_vm4, %v590_v62, %v592_v6 }
 0x1f9   : > { %v597_v19 = vsel %vm595_vm4, %v592_v6, %v594_v7  ;;  %v601_v24 = vadd.f32 %v596_v16, %v577_v18  ;;  %v603_v25 = vadd.f32 %v594_v7, %v579_v17 }
 0x1fa   : > { %v602_v27 = vadd.f32 %v597_v19, %v578_v21 }
 0x1fb   : > { %v720_v8 = vpop.permute.xlu1 %719 }
 0x1fc   : > { %v636_v9 = vpop.permute.xlu0 %635 }
 0x1fd   : > { %v640_v22 = vsel %vm639_vm8, %v634_v1, %v636_v9 }
 0x1fe   : > { %v645_v28 = vadd.f32 %v640_v22, %v601_v24 }
 0x1ff   : > { %v638_v10 = vpop.permute.xlu1 %637 }
 0x200   : > { %v753_v13 = vpop.permute.xlu0 %752  ;;  %v641_v26 = vsel %vm639_vm8, %v636_v9, %v638_v10  ;;  %v647_v29 = vadd.f32 %v638_v10, %v603_v25 }
 0x201   : > { %v646_v31 = vadd.f32 %v641_v26, %v602_v27 }
 0x203   : > { %v755_v20 = vpop.permute.xlu1 %754 }
 0x204   : > { %v722_v23 = vpop.permute.xlu0 %721  ;;  %v759_v49 = vsel %vm758_vm11, %v753_v13, %v755_v20  ;;  %v760_v50 = vsel %vm758_vm11, %v755_v20, %v757_v0 }
 0x205   : > { %v727_v42 = vsel %vm725_vm10, %v722_v23, %v724_v3  ;;  %v726_v45 = vsel %vm725_vm10, %v720_v8, %v722_v23 }
 0x207   : > { %v671_v30 = vpop.permute.xlu1 %670 }
 0x208   : > { %v675_v32 = vsel %vm674_vm9, %v669_v2, %v671_v30  ;;  %v673_v33 = vpop.permute.xlu0 %672 }
 0x209   : > { %v680_v34 = vadd.f32 %v675_v32, %v645_v28  ;;  %v676_v35 = vsel %vm674_vm9, %v671_v30, %v673_v33  ;;  %v682_v36 = vadd.f32 %v673_v33, %v647_v29 }
 0x20a   : > { %v681_v37 = vadd.f32 %v676_v35, %v646_v31 }
 0x20b   : > { %v695_v39 = vadd.f32 %v688_v4, %v680_v34  ;;  %v697_v40 = vadd.f32 %v690_v5, %v682_v36  ;;  %v777_v41 = vpop.permute.xlu1 %776 }
 0x20c   : > { %v696_v43 = vadd.f32 %v691_v38, %v681_v37  ;;  %v779_v44 = vpop.permute.xlu0 %778 }
 0x20d   : > { %v733_v46 = vadd.f32 %v727_v42, %v697_v40  ;;  %v731_v47 = vadd.f32 %v720_v8, %v695_v39  ;;  %v783_v57 = vsel %vm782_vm12, %v777_v41, %v779_v44 }
 0x20e   : > { %v732_v48 = vadd.f32 %v726_v45, %v696_v43 }
 0x20f   : > { %v764_v51 = vadd.f32 %v753_v13, %v731_v47  ;;  %v781_v52 = vpop.permute.xlu1 %780  ;;  %v766_v54 = vadd.f32 %v760_v50, %v733_v46 }
 0x210   : > { %v765_v53 = vadd.f32 %v759_v49, %v732_v48  ;;  %v810_v55 = vpop.permute.xlu0 %809  ;;  %v784_v58 = vsel %vm782_vm12, %v779_v44, %v781_v52 }
 0x211   : > { %v788_v56 = vadd.f32 %v777_v41, %v764_v51  ;;  %v790_v62 = vadd.f32 %v784_v58, %v766_v54 }
 0x212   : > { %v789_v59 = vadd.f32 %v783_v57, %v765_v53 }
 0x213   : > { %v821_v60 = vadd.f32 %v810_v55, %v788_v56  ;;  %v812_v61 = vpop.permute.xlu1 %811 }
 0x214   : > { %v816_v63 = vsel %vm815_vm13, %v810_v55, %v812_v61  ;;  %v814_v1 = vpop.permute.xlu0 %813 }
 0x215   : > { %v822_v2 = vadd.f32 %v816_v63, %v789_v59  ;;  %v817_v3 = vsel %vm815_vm13, %v812_v61, %v814_v1  ;;  %838 = vrot.lane.b32.xlu0 %v821_v60, %s1082_s23  ;;  %v853_v4 = vmul.f32 %v821_v60, %v821_v60 }
 0x216   : > { %v823_v0 = vadd.f32 %v817_v3, %v790_v62 }
 0x217   : > { %v827_v5 = vcombine.low %v821_v60, %v822_v2  ;;  %v854_v7 = vmul.f32 %v822_v2, %v822_v2 }
 0x218   : > { %830 = vrot.lane.b32.xlu1 %v823_v0, %s1082_s23  ;;  %v855_v6 = vmul.f32 %v823_v0, %v823_v0 }
 0x219   : > { %859 = vrot.lane.b32.xlu0 %v853_v4, %s1082_s23 }
 0x21c   : > { %840 = vrot.lane.b32.xlu1 %v822_v2, %s1082_s23 }
 0x21d   : > { %863 = vrot.lane.b32.xlu0 %v855_v6, %s1082_s23 }
 0x220   : > { %861 = vrot.lane.b32.xlu1 %v854_v7, %s1082_s23 }
 0x287   : > { %v839_v8 = vpop.permute.xlu0 %838 }
 0x28a   : > { %v831_v9 = vpop.permute.xlu1 %830 }
 0x28b   : > { %v860_v10 = vpop.permute.xlu0 %859  ;;  %v833_v27 = vrot.slane %v831_v9, 4 }
 0x28e   : > { %v841_v11 = vpop.permute.xlu1 %840 }
 0x28f   : > { %v842_v12 = vsel %vm798_vm6, %v839_v8, %v841_v11  ;;  %v843_v13 = vsel %vm798_vm6, %v841_v11, %v831_v9  ;;  %v864_v17 = vpop.permute.xlu0 %863 }
 0x290   : > { %v846_v14 = vsel %vm467_vm0, %v842_v12, 0.0  ;;  %v847_v15 = vsel %vm467_vm0, %v843_v13, 0.0 }
 0x291   : > { %v848_v16 = vadd.f32 %v847_v15, %v846_v14 }
 0x292   : > { %v862_v18 = vpop.permute.xlu1 %861 }
 0x293   : > { %v865_v19 = vsel %vm798_vm6, %v860_v10, %v862_v18  ;;  %v866_v20 = vsel %vm798_vm6, %v862_v18, %v864_v17  ;;  %849 = vadd.xlane.f32.xlu1 %v848_v16 }
 0x294   : > { %v869_v21 = vsel %vm467_vm0, %v865_v19, 0.0  ;;  %v870_v22 = vsel %vm467_vm0, %v866_v20, 0.0 }
 0x295   : > { %v871_v23 = vadd.f32 %v870_v22, %v869_v21 }
 0x297   : > { %872 = vadd.xlane.f32.xlu0 %v871_v23 }
 0x2ad   : > { %828 = vrot.lane.b32.xlu0 %v827_v5, %s1082_s23 }
 0x320   : > { %v850_v24 = vpop.xlane.xlu1 %849 }
 0x321   : > { %852 = vst.msk [vmem:[%s342_s9] sm:$0xf] %vm851_vm14, %v850_v24 }
 0x324   : > { %v873_v25 = vpop.xlane.xlu0 %872 }
 0x325   : > { %874 = vst.msk [vmem:[%s346_s12] sm:$0xf] %vm851_vm14, %v873_v25 }
 0x328   : > { %v829_v26 = vpop.permute.xlu0 %828 }
 0x329   : > { %v832_v28 = vrot.slane %v829_v26, 4 }
 0x32b   : > { %v834_v29 = vsel %vm467_vm0, %v832_v28, %v833_v27 }
 0x32c   : > { %v835_v30 = vsel %vm798_vm6, %v829_v26, %v834_v29 }
 0x32d   : > { %837 = vst [vmem:[%s338_s28] sm:$0xff] %v835_v30 }
 0x32e PF: > { %s19_s27 = sadd.s32 1, %s1074_s27  }
 0x32f   : > { %p16_p4 = scmp.ge.s32.totalorder %s19_s27, 4  }
 0x331   :  { %18 = sbr.rel (!%p16_p4) target bundleno = 1 (0x1), region = 102 }

// kernel: dense_block_forward.5
= control target key start
LH: loop header
LB: loop body
LE: loop exit
PB: predicated region body
PF: predicated region fallthrough
CT: control target
= control target key end

     0   :  { %s1030_s24 = smov 0   ;;  %s1160_s0 = inlined_call_operand.vmem [shape: f32[2,4,256], index: 0, kind: input, shape index: {}]   ;;  %s1161_s1 = inlined_call_operand.vmem [shape: f32[4,1], index: 1, kind: input, shape index: {}]   ;;  %s1162_s2 = inlined_call_operand.vmem [shape: f32[4,1], index: 2, kind: input, shape index: {}]   ;;  %s1163_s3 = inlined_call_operand.vmem [shape: bf16[36,4], index: 3, kind: input, shape index: {}]   ;;  %s1164_s4 = inlined_call_operand.vmem [shape: f32[2,256], index: 4, kind: input, shape index: {}]   ;;  %s1165_s5 = inlined_call_operand.vmem [shape: f32[2,4,256], index: 5, kind: output, shape index: {0}]   ;;  %s1166_s6 = inlined_call_operand.vmem [shape: f32[2,4,1], index: 6, kind: output, shape index: {1}]   ;;  %s1167_s7 = inlined_call_operand.vmem [shape: f32[2,4,1], index: 7, kind: output, shape index: {2}]  }
   0x1 LB: > { %s912_s25 = sadd.s32 4294967295, %s973_s24   ;;  %p916_p0 = scmp.ge.s32.totalorder %s973_s24, 1  ;;  %s973_s24 = sphi %s1030_s24, %s18_s24  }
   0x2   : > { %p242_p1 = scmp.lt.s32.totalorder %s973_s24, 3 }
   0x4   : > { %p243_p2 = pnand %p916_p0, %p242_p1 }
   0x5   : > { %v302_v0 = vld [vmem:[%s1161_s1] sm:$0xf] (!%p243_p2)  ;;  %v975_v1 = vmov (!%p243_p2), 0   ;;  %v310_v3 = vlaneseq (!%p243_p2)  ;;  %v976_v11 = vmov (!%p243_p2), 0.0   ;;  %s977_s11 = smov (!%p243_p2), 113   ;;  %s978_s12 = smov (!%p243_p2), 127  }
   0x6   : > { %246 = sbr.rel (%p243_p2) target bundleno = 812 (0x32c), region = 40  ;;  %963 = vset.pattern.permute.xlu0 (!%p243_p2), %v975_v1  ;;  %425 = vmatprep.mubr.bf16.mxu0 (!%p243_p2), %v975_v1  ;;  %v316_v2 = vld [vmem:[%s1162_s2] sm:$0xf] (!%p243_p2)  ;;  %455 = vst [vmem:[#allocation3 + $0x20] sm:$0xff] (!%p243_p2), %v976_v11  ;;  %454 = vst [vmem:[#allocation3] sm:$0xff] (!%p243_p2), %v976_v11  ;;  %s979_s13 = smov (!%p243_p2), 1  }
   0x7   : > { %305 = vperm.xlu0 (!%p243_p2), %963, %v302_v0   ;;  %435 = vmatprep.mubr.bf16.mxu1 (!%p243_p2), %v975_v1  ;;  %v311_v4 = vshrl.u32 (!%p243_p2), %v310_v3, 7  ;;  %v933_v6 = vld [vmem:[%s1164_s4 + $0x1] ss:$2 sm:$0x3] (!%p243_p2)  ;;  %461 = vst [vmem:[#allocation3 + $0x58] sm:$0xff] (!%p243_p2), %v976_v11  ;;  %462 = vst [vmem:[#allocation3 + $0x78] sm:$0xff] (!%p243_p2), %v976_v11 }
   0x8   : > { %v477_v8 = vld [vmem:[%s1164_s4] ss:$2 sm:$0x3] (!%p243_p2)  ;;  %463 = vst [vmem:[#allocation3 + $0x98] sm:$0xf] (!%p243_p2), %v976_v11  ;;  %s980_s14 = smov (!%p243_p2), 15  }
   0x9   : > { %v481_v5 = vsub.s32 (!%p243_p2), 0, %v311_v4  ;;  %v485_v7 = vsub.s32 (!%p243_p2), 1, %v311_v4  ;;  %s981_s15 = smov (!%p243_p2), 17   ;;  %s982_s16 = smov (!%p243_p2), 111   ;;  %v983_v16 = vmov (!%p243_p2), 839922192  }
   0xa   : > { %p282_p3 = scmp.lt.s32.totalorder (!%p243_p2), %s912_s25, 1  ;;  %v308_v17 = vunpack.c.l.s4 (!%p243_p2), %v983_v16  ;;  %vm386_vm0 = vcmask (!%p243_p2), 1041408   ;;  %v964_v33 = vld [vmem:[%s1163_s3] sm:$0xff] (!%p243_p2)   ;;  %v965_v34 = vld [vmem:[%s1163_s3 + $0x8] sm:$0xff] (!%p243_p2)   ;;  %vm376_vm1 = vcmask (!%p243_p2), 31744   ;;  %s984_s27 = smov (!%p243_p2), 126  }
   0xb   : > { %319 = vperm.xlu0 (!%p243_p2), %963, %v316_v2   ;;  %v532_v9 = vrot.slane (!%p243_p2), %v933_v6, %v481_v5  ;;  %v482_v10 = vrot.slane (!%p243_p2), %v477_v8, %v481_v5  ;;  %v536_v12 = vrot.slane (!%p243_p2), %v933_v6, %v485_v7  ;;  %v486_v13 = vrot.slane (!%p243_p2), %v477_v8, %v485_v7  ;;  %v966_v39 = vld [vmem:[%s1163_s3 + $0x10] ss:$0 sps:$4 sm:$0x33] (!%p243_p2)   ;;  %s985_s30 = smov (!%p243_p2), 110   ;;  %s986_s8 = smov (!%p243_p2), 96  }
   0xc   : > { %v309_v18 = vunpack.c.0.s8 (!%p243_p2), %v308_v17  ;;  %s987_s9 = smov (!%p243_p2), 112   ;;  %vm541_vm2 = vcmask (!%p243_p2), 924672   ;;  %vm624_vm3 = vcmask (!%p243_p2), 7168   ;;  %vm514_vm4 = vcmask (!%p243_p2), 1039360   ;;  %s988_s10 = smov (!%p243_p2), 95  }
   0xd   : > { %537 = vrot.lane.b32.xlu1 %v532_v9, %s977_s11  ;;  %v499_v14 = vld [vmem:[#allocation3] sm:$0xf0]  ;;  %s1169_s25 = smov (!%p282_p3, %s912_s25), 1  ;;  %v523_v35 = vld [vmem:[#allocation3 + $0x20] sm:$0xf]  ;;  %vm660_vm5 = vcmask 121856  }
   0xe   : > { %v505_v15 = vrot.slane %v499_v14, 4  ;;  %s936_s17 = sshll.u32 %s1169_s25, 3  ;;  %v312_v19 = vsub.s32 %v309_v18, %v311_v4  ;;  %v619_v41 = vld [vmem:[#allocation3 + $0x58] sm:$0xf0]  ;;  %v567_v45 = vld [vmem:[#allocation3 + $0x20] sm:$0xf0] }
   0xf   : > { %570 = vrot.lane.b32.xlu0 %v482_v10, %s978_s12  ;;  %s286_s20 = scalar_lea.vmem %s1160_s0, %s936_s17  ;;  %v655_v46 = vld [vmem:[#allocation3 + $0x78] sm:$0xf]  ;;  %vm717_vm6 = vcmask 138240   ;;  %vm491_vm7 = vcmask 908288   ;;  %vm558_vm8 = vcmask 1031168   ;;  %vm593_vm9 = vcmask 916480   ;;  %s291_s22 = scalar_lea.vmem %s1165_s5, %s936_s17 }
  0x10   : > { %v301_v22 = vld [vmem:[%s286_s20] sm:$0xff]  ;;  %vm644_vm10 = vcmask 900096   ;;  %vm677_vm11 = vcmask 785408   ;;  %vm701_vm12 = vcmask 777216   ;;  %vm734_vm13 = vcmask 769024  }
  0x11   : > { %539 = vrot.lane.b32.xlu1 %v536_v12, %s977_s11  ;;  %s989_s11 = smov 94   ;;  %vm753_vm14 = vcmask 1043456   ;;  %vm771_vm15 = vcmask 3072  }
  0x13   : > { %620 = vrot.lane.b32.xlu0 %v532_v9, %s979_s13 }
  0x15   : > { %572 = vrot.lane.b32.xlu1 %v486_v13, %s978_s12 }
  0x17   : > { %656 = vrot.lane.b32.xlu0 %v482_v10, %s980_s14 }
  0x19   : > { %622 = vrot.lane.b32.xlu1 %v536_v12, %s979_s13 }
  0x1b   : > { %713 = vrot.lane.b32.xlu0 %v532_v9, %s981_s15 }
  0x1d   : > { %658 = vrot.lane.b32.xlu1 %v486_v13, %s980_s14 }
  0x1f   : > { %487 = vrot.lane.b32.xlu0 %v482_v10, %s982_s16 }
  0x21   : > { %715 = vrot.lane.b32.xlu1 %v536_v12, %s981_s15 }
  0x23   : > { %508 = vrot.lane.b32.xlu0 %v505_v15, %s978_s12 }
  0x25   : > { %489 = vrot.lane.b32.xlu1 %v486_v13, %s982_s16 }
  0x7f   : > { %v1078_v36 = vpop.permute.xlu1 %537 }
  0x80   : > { %v546_v37 = vmul.f32 %v1078_v36, %v523_v35 }
  0x82   : > { %552 = vrot.lane.b32.xlu1 %v546_v37, %s984_s27 }
  0x83   : > { %v1083_v38 = vpop.permute.xlu1 %539 }
  0x84   : > { %v542_v10 = vsel %vm541_vm2, %v1078_v36, %v1083_v38 }
  0x86   : > { %v306_v20 = vpop.permute.xlu0 %305 }
  0x87   : > { %v313_v21 = vrot.slane %v306_v20, %v312_v19  ;;  %v1088_v40 = vpop.permute.xlu1 %572 }
  0x89   : > { %v315_v24 = vmul.f32 %v313_v21, %v301_v22 }
  0x8a   : > { %v320_v23 = vpop.permute.xlu0 %319 }
  0x8b   : > { %v327_v25 = vrot.slane %v320_v23, %v312_v19  ;;  %v1090_v42 = vpop.permute.xlu1 %622 }
  0x8c   : > { %v631_v43 = vmul.f32 %v1090_v42, %v619_v41  ;;  %v712_v41 = vld [vmem:[#allocation3 + $0x98] sm:$0xf] }
  0x8d   : > { %v329_v26 = vadd.f32 %v327_v25, %v315_v24 }
  0x8e   : > { %v637_v44 = vrot.slane %v631_v43, 4  ;;  %v1096_v48 = vpop.permute.xlu0 %570 }
  0x8f   : > { %v330_v27 = vmax.f32 %v329_v26, 0.0  ;;  %v1094_v47 = vpop.permute.xlu1 %658  ;;  %v578_v49 = vmul.f32 %v1096_v48, %v567_v45  ;;  %v574_v24 = vsel %vm514_vm4, %v1096_v48, %v1088_v40 }
  0x90   : > { %642 = vrot.lane.b32.xlu1 %v637_v44, %s985_s30  ;;  %v667_v50 = vmul.f32 %v1094_v47, %v655_v46 }
  0x91   : > { %v332_v28 = vcombine.high %v330_v27, %v330_v27  ;;  %v584_v51 = vrot.slane %v578_v49, 4 }
  0x92   : > { %675 = vrot.lane.b32.xlu0 %v667_v50, %s986_s8 }
  0x93   : > { %v923_v29 = vpack.c.bf16 %v332_v28, %v330_v27 }
  0x95   : > { %924 = vst.sshfl [vmem:[#allocation2] sm:$0x33 pattern:$0x76325410] %v923_v29 }
  0x96   : > { %587 = vrot.lane.b32.xlu0 %v584_v51, %s987_s9 }
  0x9c   : > { %v928_v30 = vld.sshfl [vmem:[#allocation2] sm:$0x33 pattern:$0x76325410] }
  0x9d   : > { %v375_v31 = vcombine.high %v928_v30, %v928_v30  ;;  %v388_v32 = vsel %vm386_vm0, %v928_v30, 0 }
  0x9f   : > { %929 = vmatprep.subr.msk.bf16.mxu0 %vm386_vm0, %v375_v31  ;;  %938 = vmatprep.subr.msk.bf16.mxu1 %vm386_vm0, %v375_v31 }
  0xa0   : > { %394 = vmatpush1.bf16.msra.mxu0 %v388_v32  ;;  %939 = vmatpush1.bf16.msra.mxu1 %v388_v32 }
  0xa3   : > { %930 = vmatmul.mubr.msk.bf16.vlgmr.msra.gmra.mrb[0].mxu0 %vm376_vm1, %v964_v33  ;;  %931 = vmatmul.mubr.msk.bf16.vlgmr.msra.gmra.mrb[0].mxu1 %vm376_vm1, %v965_v34  ;;  %v688_v34 = vld [vmem:[#allocation3 + $0x78] sm:$0xf0] }
  0xa4   : > { %445 = vmatprep.mubr.bf16.mxu1 %v975_v1  ;;  %v621_v1 = vpop.permute.xlu0 %620 }
  0xa5   : > { %v625_v16 = vsel %vm624_vm3, %v621_v1, %v1090_v42  ;;  %v716_v42 = vpop.permute.xlu1 %715 }
  0xa6   : > { %v724_v45 = vmul.f32 %v716_v42, %v712_v41 }
  0xa8   : > { %v657_v17 = vpop.permute.xlu0 %656 }
  0xa9   : > { %v661_v25 = vsel %vm660_vm5, %v657_v17, %v1094_v47  ;;  %v490_v49 = vpop.permute.xlu1 %489 }
  0xab   : > { %932 = vmatmul.mubr.msk.bf16.gmra.mrb[4].mxu1 %vm376_vm1, %v966_v39  ;;  %v694_v39 = vrot.slane %v688_v34, 4 }
  0xf4   : > { %v553_v51 = vpop.permute.xlu1 %552 }
 0x176   : > { %v427_v52 = vpop.f32.mrb[0].mxu0  ;;  %v437_v53 = vpop.f32.mrb[0].mxu1 }
 0x177   : > { %464 = vst [vmem:[#allocation3 + $0x8] sm:$0xff] %v427_v52  ;;  %468 = vst [vmem:[#allocation3 + $0x48] sm:$0xff] %v437_v53  ;;  %v429_v54 = vpop.f32.mrb[1].mxu0  ;;  %v439_v55 = vpop.f32.mrb[1].mxu1 }
 0x178   : > { %465 = vst [vmem:[#allocation3 + $0x10] sm:$0xff] %v429_v54  ;;  %469 = vst [vmem:[#allocation3 + $0x50] sm:$0xff] %v439_v55  ;;  %v431_v56 = vpop.f32.mrb[2].mxu0  ;;  %v441_v57 = vpop.f32.mrb[2].mxu1 }
 0x179   : > { %466 = vst [vmem:[#allocation3 + $0x28] sm:$0xff] %v431_v56  ;;  %470 = vst [vmem:[#allocation3 + $0x68] sm:$0xff] %v441_v57  ;;  %v433_v58 = vpop.f32.mrb[3].mxu0  ;;  %v443_v59 = vpop.f32.mrb[3].mxu1 }
 0x17a   : > { %467 = vst [vmem:[#allocation3 + $0x30] sm:$0xff] %v433_v58  ;;  %471 = vst [vmem:[#allocation3 + $0x70] sm:$0xff] %v443_v59  ;;  %v643_v53 = vpop.permute.xlu1 %642 }
 0x17e   : > { %v602_v60 = vld [vmem:[#allocation3 + $0x48] sm:$0xf]  ;;  %v500_v61 = vld [vmem:[#allocation3 + $0x8] sm:$0xf0]  ;;  %v447_v0 = vpop.f32.mrb[4].mxu1 }
 0x17f   : > { %606 = vrot.lane.b32.xlu1 %v602_v60, %s982_s16  ;;  %v603_v62 = vld [vmem:[#allocation3 + $0x50] sm:$0xf]  ;;  %v506_v63 = vrot.slane %v500_v61, 4  ;;  %v501_v2 = vld [vmem:[#allocation3 + $0x10] sm:$0xf0]  ;;  %v449_v6 = vpop.f32.mrb[5].mxu1 }
 0x180   : > { %608 = vrot.lane.b32.xlu0 %v603_v62, %s982_s16  ;;  %v617_v3 = vld [vmem:[#allocation3 + $0x48] sm:$0xf0]  ;;  %472 = vst [vmem:[#allocation3 + $0x88] sm:$0xf] %v447_v0  ;;  %v507_v4 = vrot.slane %v501_v2, 4  ;;  %v451_v7 = vpop.f32.mrb[6].mxu1 }
 0x181   : > { %v629_v5 = vmul.f32 %v621_v1, %v617_v3  ;;  %473 = vst [vmem:[#allocation3 + $0x90] sm:$0xf] %v449_v6  ;;  %v524_v8 = vld [vmem:[#allocation3 + $0x28] sm:$0xf]  ;;  %v452_v9 = vpop.f32.mrb[7].mxu1 }
 0x182   : > { %v547_v12 = vmul.f32 %v542_v10, %v524_v8  ;;  %v525_v13 = vld [vmem:[#allocation3 + $0x30] sm:$0xf]  ;;  %v653_v14 = vld [vmem:[#allocation3 + $0x68] sm:$0xf]  ;;  %v618_v15 = vld [vmem:[#allocation3 + $0x50] sm:$0xf0] }
 0x183   : > { %510 = vrot.lane.b32.xlu1 %v506_v63, %s978_s12  ;;  %v635_v11 = vrot.slane %v629_v5, 4  ;;  %v548_v18 = vmul.f32 %v1083_v38, %v525_v13  ;;  %v665_v19 = vmul.f32 %v657_v17, %v653_v14  ;;  %v654_v20 = vld [vmem:[#allocation3 + $0x70] sm:$0xf]  ;;  %v630_v21 = vmul.f32 %v625_v16, %v618_v15  ;;  %v568_v22 = vld [vmem:[#allocation3 + $0x28] sm:$0xf0]  ;;  %v714_v38 = vpop.permute.xlu0 %713 }
 0x184   : > { %512 = vrot.lane.b32.xlu0 %v507_v4, %s978_s12  ;;  %v569_v23 = vld [vmem:[#allocation3 + $0x30] sm:$0xf0]  ;;  %v666_v26 = vmul.f32 %v661_v25, %v654_v20  ;;  %v579_v27 = vmul.f32 %v574_v24, %v568_v22  ;;  %v686_v32 = vld [vmem:[#allocation3 + $0x68] sm:$0xf0]  ;;  %v718_v43 = vsel %vm717_vm6, %v714_v38, %v716_v42  ;;  %v476_v61 = vld [vmem:[#allocation3 + $0x10] sm:$0xf] }
 0x185   : > { %v636_v28 = vrot.slane %v630_v21, 4  ;;  %v580_v29 = vmul.f32 %v1088_v40, %v569_v23  ;;  %v687_v33 = vld [vmem:[#allocation3 + $0x70] sm:$0xf0]  ;;  %v692_v35 = vrot.slane %v686_v32, 4  ;;  %v474_v62 = vld [vmem:[#allocation3] sm:$0xf]  ;;  %v498_v3 = vmul.f32 %v490_v49, %v476_v61 }
 0x186   : > { %v585_v30 = vrot.slane %v579_v27, 4  ;;  %v693_v37 = vrot.slane %v687_v33, 4  ;;  %v475_v0 = vld [vmem:[#allocation3 + $0x8] sm:$0xf]  ;;  %s921_s12 = sshll.u32 %s1169_s25, 2 }
 0x187   : > { %638 = vrot.lane.b32.xlu1 %v635_v11, %s985_s30  ;;  %v586_v31 = vrot.slane %v580_v29, 4  ;;  %v710_v36 = vld [vmem:[#allocation3 + $0x88] sm:$0xf]  ;;  %v488_v47 = vpop.permute.xlu0 %487  ;;  %s295_s16 = scalar_lea.vmem %s1166_s6, %s921_s12  ;;  %s299_s20 = scalar_lea.vmem %s1167_s7, %s921_s12 }
 0x188   : > { %554 = vrot.lane.b32.xlu0 %v547_v12, %s984_s27  ;;  %v722_v40 = vmul.f32 %v714_v38, %v710_v36  ;;  %v711_v44 = vld [vmem:[#allocation3 + $0x90] sm:$0xf]  ;;  %v492_v1 = vsel %vm491_vm7, %v488_v47, %v490_v49  ;;  %v496_v4 = vmul.f32 %v488_v47, %v474_v62 }
 0x189   : > { %v723_v46 = vmul.f32 %v718_v43, %v711_v44  ;;  %v497_v7 = vmul.f32 %v492_v1, %v475_v0 }
 0x18b   : > { %556 = vrot.lane.b32.xlu1 %v548_v18, %s984_s27  ;;  %v509_v48 = vpop.permute.xlu0 %508 }
 0x18c   : > { %671 = vrot.lane.b32.xlu0 %v665_v19, %s986_s8 }
 0x18f   : > { %673 = vrot.lane.b32.xlu1 %v666_v26, %s986_s8  ;;  %v676_v50 = vpop.permute.xlu0 %675 }
 0x190   : > { %640 = vrot.lane.b32.xlu0 %v636_v28, %s985_s30 }
 0x193   : > { %589 = vrot.lane.b32.xlu1 %v585_v30, %s987_s9  ;;  %v588_v52 = vpop.permute.xlu0 %587 }
 0x194   : > { %591 = vrot.lane.b32.xlu0 %v586_v31, %s987_s9 }
 0x197   : > { %695 = vrot.lane.b32.xlu1 %v692_v35, %s988_s10 }
 0x198   : > { %697 = vrot.lane.b32.xlu0 %v693_v37, %s988_s10 }
 0x19b   : > { %699 = vrot.lane.b32.xlu1 %v694_v39, %s988_s10 }
 0x19c   : > { %728 = vrot.lane.b32.xlu0 %v722_v40, %s989_s11 }
 0x19f   : > { %730 = vrot.lane.b32.xlu1 %v723_v46, %s989_s11 }
 0x1a0   : > { %732 = vrot.lane.b32.xlu0 %v724_v45, %s989_s11 }
 0x1f1   : > { %v607_v54 = vpop.permute.xlu1 %606 }
 0x1f2   : > { %v609_v55 = vpop.permute.xlu0 %608 }
 0x1f3   : > { %v610_v24 = vsel %vm491_vm7, %v607_v54, %v609_v55 }
 0x1f5   : > { %v511_v56 = vpop.permute.xlu1 %510 }
 0x1f6   : > { %v513_v57 = vpop.permute.xlu0 %512  ;;  %v515_v2 = vsel %vm514_vm4, %v509_v48, %v511_v56 }
 0x1f7   : > { %v516_v5 = vsel %vm514_vm4, %v511_v56, %v513_v57  ;;  %v520_v10 = vadd.f32 %v515_v2, %v496_v4  ;;  %v522_v11 = vadd.f32 %v513_v57, %v498_v3 }
 0x1f8   : > { %v521_v13 = vadd.f32 %v516_v5, %v497_v7 }
 0x1f9   : > { %v639_v58 = vpop.permute.xlu1 %638 }
 0x1fa   : > { %v555_v59 = vpop.permute.xlu0 %554 }
 0x1fb   : > { %v559_v8 = vsel %vm558_vm8, %v553_v51, %v555_v59 }
 0x1fc   : > { %v564_v14 = vadd.f32 %v559_v8, %v520_v10 }
 0x1fd   : > { %v557_v60 = vpop.permute.xlu1 %556 }
 0x1fe   : > { %v672_v63 = vpop.permute.xlu0 %671  ;;  %v560_v12 = vsel %vm558_vm8, %v555_v59, %v557_v60  ;;  %v566_v15 = vadd.f32 %v557_v60, %v522_v11 }
 0x1ff   : > { %v565_v17 = vadd.f32 %v560_v12, %v521_v13 }
 0x201   : > { %v674_v6 = vpop.permute.xlu1 %673 }
 0x202   : > { %v641_v9 = vpop.permute.xlu0 %640  ;;  %v678_v35 = vsel %vm677_vm11, %v672_v63, %v674_v6  ;;  %v679_v36 = vsel %vm677_vm11, %v674_v6, %v676_v50 }
 0x203   : > { %v646_v28 = vsel %vm644_vm10, %v641_v9, %v643_v53  ;;  %v645_v31 = vsel %vm644_vm10, %v639_v58, %v641_v9 }
 0x205   : > { %v590_v16 = vpop.permute.xlu1 %589 }
 0x206   : > { %v594_v18 = vsel %vm593_vm9, %v588_v52, %v590_v16  ;;  %v592_v19 = vpop.permute.xlu0 %591 }
 0x207   : > { %v599_v20 = vadd.f32 %v594_v18, %v564_v14  ;;  %v595_v21 = vsel %vm593_vm9, %v590_v16, %v592_v19  ;;  %v601_v22 = vadd.f32 %v592_v19, %v566_v15 }
 0x208   : > { %v600_v23 = vadd.f32 %v595_v21, %v565_v17 }
 0x209   : > { %v614_v25 = vadd.f32 %v607_v54, %v599_v20  ;;  %v616_v26 = vadd.f32 %v609_v55, %v601_v22  ;;  %v696_v27 = vpop.permute.xlu1 %695 }
 0x20a   : > { %v615_v29 = vadd.f32 %v610_v24, %v600_v23  ;;  %v698_v30 = vpop.permute.xlu0 %697 }
 0x20b   : > { %v652_v32 = vadd.f32 %v646_v28, %v616_v26  ;;  %v650_v33 = vadd.f32 %v639_v58, %v614_v25  ;;  %v702_v43 = vsel %vm701_vm12, %v696_v27, %v698_v30 }
 0x20c   : > { %v651_v34 = vadd.f32 %v645_v31, %v615_v29 }
 0x20d   : > { %v683_v37 = vadd.f32 %v672_v63, %v650_v33  ;;  %v700_v38 = vpop.permute.xlu1 %699  ;;  %v685_v40 = vadd.f32 %v679_v36, %v652_v32 }
 0x20e   : > { %v684_v39 = vadd.f32 %v678_v35, %v651_v34  ;;  %v729_v41 = vpop.permute.xlu0 %728  ;;  %v703_v44 = vsel %vm701_vm12, %v698_v30, %v700_v38 }
 0x20f   : > { %v707_v42 = vadd.f32 %v696_v27, %v683_v37  ;;  %v709_v48 = vadd.f32 %v703_v44, %v685_v40 }
 0x210   : > { %v708_v45 = vadd.f32 %v702_v43, %v684_v39 }
 0x211   : > { %v740_v46 = vadd.f32 %v729_v41, %v707_v42  ;;  %v731_v47 = vpop.permute.xlu1 %730 }
 0x212   : > { %v735_v49 = vsel %vm734_vm13, %v729_v41, %v731_v47  ;;  %v733_v51 = vpop.permute.xlu0 %732 }
 0x213   : > { %v741_v52 = vadd.f32 %v735_v49, %v708_v45  ;;  %v736_v53 = vsel %vm734_vm13, %v731_v47, %v733_v51  ;;  %758 = vrot.lane.b32.xlu0 %v740_v46, %s981_s15  ;;  %v773_v54 = vmul.f32 %v740_v46, %v740_v46 }
 0x214   : > { %v742_v50 = vadd.f32 %v736_v53, %v709_v48 }
 0x215   : > { %v746_v55 = vcombine.low %v740_v46, %v741_v52  ;;  %v774_v57 = vmul.f32 %v741_v52, %v741_v52 }
 0x216   : > { %749 = vrot.lane.b32.xlu1 %v742_v50, %s981_s15  ;;  %v775_v56 = vmul.f32 %v742_v50, %v742_v50 }
 0x217   : > { %779 = vrot.lane.b32.xlu0 %v773_v54, %s981_s15 }
 0x21a   : > { %760 = vrot.lane.b32.xlu1 %v741_v52, %s981_s15 }
 0x21b   : > { %783 = vrot.lane.b32.xlu0 %v775_v56, %s981_s15 }
 0x21e   : > { %781 = vrot.lane.b32.xlu1 %v774_v57, %s981_s15 }
 0x285   : > { %v759_v58 = vpop.permute.xlu0 %758 }
 0x288   : > { %v750_v59 = vpop.permute.xlu1 %749 }
 0x289   : > { %v780_v60 = vpop.permute.xlu0 %779  ;;  %v752_v13 = vrot.slane %v750_v59, 4 }
 0x28c   : > { %v761_v61 = vpop.permute.xlu1 %760 }
 0x28d   : > { %v762_v62 = vsel %vm717_vm6, %v759_v58, %v761_v61  ;;  %v763_v63 = vsel %vm717_vm6, %v761_v61, %v750_v59  ;;  %v784_v3 = vpop.permute.xlu0 %783 }
 0x28e   : > { %v766_v0 = vsel %vm753_vm14, %v762_v62, 0.0  ;;  %v767_v1 = vsel %vm753_vm14, %v763_v63, 0.0 }
 0x28f   : > { %v768_v2 = vadd.f32 %v767_v1, %v766_v0 }
 0x290   : > { %v782_v4 = vpop.permute.xlu1 %781 }
 0x291   : > { %v785_v5 = vsel %vm717_vm6, %v780_v60, %v782_v4  ;;  %v786_v6 = vsel %vm717_vm6, %v782_v4, %v784_v3  ;;  %769 = vadd.xlane.f32.xlu1 %v768_v2 }
 0x292   : > { %v789_v7 = vsel %vm753_vm14, %v785_v5, 0.0  ;;  %v790_v8 = vsel %vm753_vm14, %v786_v6, 0.0 }
 0x293   : > { %v791_v9 = vadd.f32 %v790_v8, %v789_v7 }
 0x295   : > { %792 = vadd.xlane.f32.xlu0 %v791_v9 }
 0x2ab   : > { %747 = vrot.lane.b32.xlu0 %v746_v55, %s981_s15 }
 0x31e   : > { %v770_v10 = vpop.xlane.xlu1 %769 }
 0x31f   : > { %772 = vst.msk [vmem:[%s295_s16] sm:$0xf] %vm771_vm15, %v770_v10 }
 0x322   : > { %v793_v11 = vpop.xlane.xlu0 %792 }
 0x323   : > { %794 = vst.msk [vmem:[%s299_s20] sm:$0xf] %vm771_vm15, %v793_v11 }
 0x326   : > { %v748_v12 = vpop.permute.xlu0 %747 }
 0x327   : > { %v751_v14 = vrot.slane %v748_v12, 4 }
 0x329   : > { %v754_v15 = vsel %vm753_vm14, %v751_v14, %v752_v13 }
 0x32a   : > { %v755_v16 = vsel %vm717_vm6, %v748_v12, %v754_v15 }
 0x32b   : > { %757 = vst [vmem:[%s291_s22] sm:$0xff] %v755_v16 }
 0x32c PF: > { %s18_s24 = sadd.s32 1, %s973_s24  }
 0x32d   : > { %p15_p4 = scmp.ge.s32.totalorder %s18_s24, 4  }
 0x32f   :  { %17 = sbr.rel (!%p15_p4) target bundleno = 1 (0x1), region = 95 }

// kernel: dense_block_forward.7
= control target key start
LH: loop header
LB: loop body
LE: loop exit
PB: predicated region body
PF: predicated region fallthrough
CT: control target
= control target key end

     0   :  { %s1693_s0 = inlined_call_operand.vmem [shape: f32[2,4,256], index: 0, kind: input, shape index: {}]   ;;  %s1694_s1 = inlined_call_operand.vmem [shape: f32[2,4,256], index: 1, kind: input, shape index: {}]   ;;  %s1695_s2 = inlined_call_operand.vmem [shape: f32[2,4,256], index: 2, kind: input, shape index: {}]   ;;  %s1696_s3 = inlined_call_operand.vmem [shape: f32[12,1], index: 3, kind: input, shape index: {}]   ;;  %s1697_s4 = inlined_call_operand.vmem [shape: f32[12,1], index: 4, kind: input, shape index: {}]   ;;  %s1698_s5 = inlined_call_operand.vmem [shape: bf16[36,12], index: 5, kind: input, shape index: {}]   ;;  %s1699_s6 = inlined_call_operand.vmem [shape: f32[2,256], index: 6, kind: input, shape index: {}]   ;;  %s1700_s7 = inlined_call_operand.vmem [shape: f32[2,4,256], index: 7, kind: output, shape index: {0}]   ;;  %s1701_s8 = inlined_call_operand.hbm [shape: f32[2,4,1], index: 8, kind: output, shape index: {1}]   ;;  %s1702_s9 = inlined_call_operand.hbm [shape: f32[2,4,1], index: 9, kind: output, shape index: {2}]  }
   0x1   :  { %1706 = sst [smem:[#allocation10_spill]] %s1693_s0 }
   0x2   :  { %1707 = sst [smem:[#allocation11_spill]] %s1694_s1 }
   0x3   :  { %15 = vsyncpa [#allocation5], 0 }
   0x4   :  { %17 = vsyncpa [#allocation5 + $0x1], 0 }
   0x5   :  { %18 = vsyncpa [#allocation7], 0 }
   0x6   :  { %20 = vsyncpa [#allocation7 + $0x1], 0  ;;  %s1421_s30 = smov 0   ;;  %s1423_s10 = smov 0  }
   0x7   :  { %s1425_s11 = smov 0   ;;  %s1427_s12 = smov 0  }
   0x8 LB: > { %s1442_s13 = sadd.s32 4294967295, %s1352_s12   ;;  %s1149_s14 = sadd.s32 4294967294, %s1352_s12   ;;  %s1352_s12 = sphi %s1427_s12, %s1718_s12   ;;  %s1348_s11 = sphi %s1425_s11, %s1717_s11   ;;  %s1344_s10 = sphi %s1423_s10, %s1716_s10   ;;  %s1340_s30 = sphi %s1421_s30, %s1715_s30  }
   0x9   : > { %s1446_s15 = sadd.s32 1, %s1352_s12   ;;  %s221_s16 = sadd.s32 1, %s1348_s11 }
   0xa   : > { %s218_s17 = ssub.s32 %s1352_s12, %s1446_s15  ;;  %p231_p0 = scmp.ne.s32.totalorder %s1348_s11, %s1344_s10 }
   0xb   : > { %p219_p1 = scmp.eq.s32.totalorder %s218_s17, 0  ;;  %p232_p2 = scmp.eq.s32.totalorder %s1442_s13, 1 }
   0xc   : > { %p237_p3 = scmp.ne.s32.totalorder %s1344_s10, %s1340_s30  ;;  %p238_p4 = scmp.eq.s32.totalorder %s1149_s14, 1 }
   0xd   : > { %s1457_s18 = scalar_select %p219_p1, %s1348_s11, %s221_s16  }
   0xe   : > { %p1459_p5 = por %p232_p2, %p231_p0  ;;  %p1463_p6 = por %p238_p4, %p237_p3 }
   0xf   : > { %p1152_p7 = scmp.ge.s32.totalorder %s1352_s12, 1  ;;  %p318_p8 = scmp.lt.s32.totalorder %s1352_s12, 3 }
  0x11   : > { %p319_p9 = pnand %p1152_p7, %p318_p8 }
  0x12   : > { %v452_v0 = vld [vmem:[%s1697_s4 + $0x4] sm:$0xf] (!%p319_p9)  ;;  %v1354_v2 = vmov (!%p319_p9), 0   ;;  %v481_v3 = vld [vmem:[%s1696_s3 + $0x8] sm:$0xf] (!%p319_p9)  ;;  %v404_v7 = vlaneseq (!%p319_p9)  ;;  %v1355_v15 = vmov (!%p319_p9), 0.0  }
  0x13   : > { %322 = sbr.rel (%p319_p9) target bundleno = 857 (0x359), region = 48  ;;  %v438_v1 = vld [vmem:[%s1696_s3 + $0x4] sm:$0xf] (!%p319_p9)  ;;  %1251 = vset.pattern.permute.xlu1 (!%p319_p9), %v1354_v2  ;;  %1250 = vset.pattern.permute.xlu0 (!%p319_p9), %v1354_v2  ;;  %v396_v4 = vld [vmem:[%s1696_s3] sm:$0xf] (!%p319_p9)  ;;  %629 = vst [vmem:[#allocation3 + $0x20] sm:$0xff] (!%p319_p9), %v1355_v15 }
  0x14   : > { %455 = vperm.xlu1 (!%p319_p9), %1251, %v452_v0   ;;  %441 = vperm.xlu0 (!%p319_p9), %1250, %v438_v1   ;;  %v495_v5 = vld [vmem:[%s1697_s4 + $0x8] sm:$0xf] (!%p319_p9)  ;;  %v410_v6 = vld [vmem:[%s1697_s4] sm:$0xf] (!%p319_p9)  ;;  %v405_v8 = vshrl.u32 (!%p319_p9), %v404_v7, 7  ;;  %628 = vst [vmem:[#allocation3] sm:$0xff] (!%p319_p9), %v1355_v15 }
  0x15   : > { %599 = vmatprep.mubr.bf16.mxu0 (!%p319_p9), %v1354_v2  ;;  %609 = vmatprep.mubr.bf16.mxu1 (!%p319_p9), %v1354_v2  ;;  %v1175_v10 = vld [vmem:[%s1699_s6 + $0x1] ss:$2 sm:$0x3] (!%p319_p9)  ;;  %v651_v12 = vld [vmem:[%s1699_s6] ss:$2 sm:$0x3] (!%p319_p9) }
  0x16   : > { %v659_v9 = vsub.s32 (!%p319_p9), 1, %v405_v8  ;;  %v655_v11 = vsub.s32 (!%p319_p9), 0, %v405_v8  ;;  %635 = vst [vmem:[#allocation3 + $0x58] sm:$0xff] (!%p319_p9), %v1355_v15  ;;  %636 = vst [vmem:[#allocation3 + $0x78] sm:$0xff] (!%p319_p9), %v1355_v15  ;;  %s1356_s25 = smov (!%p319_p9), 113   ;;  %s1357_s26 = smov (!%p319_p9), 127  }
  0x17   : > { %637 = vst [vmem:[#allocation3 + $0x98] sm:$0xf] (!%p319_p9), %v1355_v15  ;;  %s1358_s27 = smov (!%p319_p9), 1   ;;  %s1359_s28 = smov (!%p319_p9), 15   ;;  %v1362_v20 = vmov (!%p319_p9), 839922192  }
  0x18   : > { %484 = vperm.xlu1 (!%p319_p9), %1251, %v481_v3   ;;  %399 = vperm.xlu0 (!%p319_p9), %1250, %v396_v4   ;;  %v710_v13 = vrot.slane (!%p319_p9), %v1175_v10, %v659_v9  ;;  %v706_v14 = vrot.slane (!%p319_p9), %v1175_v10, %v655_v11  ;;  %v660_v16 = vrot.slane (!%p319_p9), %v651_v12, %v659_v9  ;;  %s1703_s29 = smov (!%p319_p9), 17   ;;  %s1361_s14 = smov (!%p319_p9), 111   ;;  %v402_v21 = vunpack.c.l.s4 (!%p319_p9), %v1362_v20  ;;  %v1255_v58 = vld [vmem:[%s1698_s5] sm:$0xff] (!%p319_p9)   ;;  %v1256_v59 = vld [vmem:[%s1698_s5 + $0x8] sm:$0xff] (!%p319_p9)  }
  0x19   : > { %v656_v17 = vrot.slane (!%p319_p9), %v651_v12, %v655_v11  ;;  %p374_p10 = scmp.lt.s32.totalorder (!%p319_p9), %s1442_s13, 1  ;;  %s1710_s1 = sld [smem:[#allocation11_spill]] (!%p319_p9)  ;;  %vm560_vm0 = vcmask (!%p319_p9), 1045504   ;;  %vm550_vm1 = vcmask (!%p319_p9), 97280   ;;  %vm715_vm2 = vcmask (!%p319_p9), 924672  }
  0x1a   : > { %v403_v22 = vunpack.c.0.s8 %v402_v21  ;;  %s1711_s0 = sld [smem:[#allocation10_spill]]  ;;  %v697_v60 = vld [vmem:[#allocation3 + $0x20] sm:$0xf]  ;;  %s1363_s24 = smov 126   ;;  %vm798_vm3 = vcmask 7168   ;;  %vm688_vm4 = vcmask 1039360  }
  0x1b   : > { %v673_v18 = vld [vmem:[#allocation3] sm:$0xf0]  ;;  %s375_s16 = scalar_select %p374_p10, %s1442_s13, 1  ;;  %v1257_v1 = vld [vmem:[%s1698_s5 + $0x10] ss:$0 sps:$4 sm:$0x33]  }
  0x1c   : > { %498 = vperm.xlu1 %1251, %v495_v5   ;;  %413 = vperm.xlu0 %1250, %v410_v6   ;;  %v679_v19 = vrot.slane %v673_v18, 4  ;;  %v406_v23 = vsub.s32 %v403_v22, %v405_v8  ;;  %vm834_vm5 = vcmask 121856   ;;  %vm891_vm6 = vcmask 138240   ;;  %s1712_s21 = smov 17   ;;  %s1595_s22 = sand.u32 1, %s1344_s10  }
  0x1d   : > { %s1506_s17 = sshll.u32 %s375_s16, 3  ;;  %v793_v3 = vld [vmem:[#allocation3 + $0x58] sm:$0xf0]  ;;  %v829_v7 = vld [vmem:[#allocation3 + $0x78] sm:$0xf]  ;;  %s1365_s16 = smov 96  }
  0x1e   : > { %vm665_vm7 = vcmask 908288   ;;  %vm732_vm8 = vcmask 1031168   ;;  %vm767_vm9 = vcmask 916480   ;;  %vm818_vm10 = vcmask 900096  }
  0x1f   : > { %s383_s23 = scalar_lea.vmem %s1710_s1, %s1506_s17  ;;  %vm851_vm11 = vcmask 785408   ;;  %vm875_vm12 = vcmask 777216   ;;  %vm908_vm13 = vcmask 769024   ;;  %vm927_vm14 = vcmask 1043456  }
  0x20   : > { %713 = vrot.lane.b32.xlu1 %v710_v13, %s1356_s25  ;;  %711 = vrot.lane.b32.xlu0 %v706_v14, %s1356_s25  ;;  %v437_v26 = vld [vmem:[%s383_s23] sm:$0xff]  ;;  %s1153_s23 = sshll.u32 %s1595_s22, 2  ;;  %vm945_vm15 = vcmask 3072  }
  0x21   : > { %s366_s25 = scalar_lea.vmem [#allocation4], %s1153_s23 }
  0x24   : > { %746 = vrot.lane.b32.xlu1 %v660_v16, %s1357_s26  ;;  %744 = vrot.lane.b32.xlu0 %v656_v17, %s1357_s26 }
  0x28   : > { %796 = vrot.lane.b32.xlu1 %v710_v13, %s1358_s27  ;;  %794 = vrot.lane.b32.xlu0 %v706_v14, %s1358_s27  ;;  %s388_s27 = scalar_lea.vmem %s1695_s2, %s1506_s17 }
  0x29   : > { %v480_v33 = vld [vmem:[%s388_s27] sm:$0xff]  ;;  %s996_s27 = sshll.u32 %s366_s25, 4  ;;  %s1606_s27 = int_to_ptr.vmem [resolvable:$true] %s996_s27 }
  0x2c   : > { %832 = vrot.lane.b32.xlu1 %v660_v16, %s1359_s28  ;;  %830 = vrot.lane.b32.xlu0 %v656_v17, %s1359_s28  ;;  %s1364_s28 = smov 110  }
  0x30   : > { %889 = vrot.lane.b32.xlu1 %v710_v13, %s1703_s29  ;;  %887 = vrot.lane.b32.xlu0 %v706_v14, %s1703_s29  ;;  %s378_s29 = scalar_lea.vmem %s1711_s0, %s1506_s17  ;;  %s1258_s0 = scalar_lea.vmem %s1606_s27, 64 }
  0x31   : > { %v395_v36 = vld [vmem:[%s378_s29] sm:$0xff]  ;;  %s1366_s29 = smov 112   ;;  %p1259_p11 = scmp.ne.s32.totalorder %s1606_s27, %s1258_s0 }
  0x33   : > { %p1260_p12 = pnand %p1259_p11, %p1459_p5 }
  0x34   : > { %663 = vrot.lane.b32.xlu1 %v660_v16, %s1361_s14  ;;  %661 = vrot.lane.b32.xlu0 %v656_v17, %s1361_s14 }
  0x35   : > { %p1261_p13 = pneg %p1260_p12 }
  0x38   : > { %682 = vrot.lane.b32.xlu0 %v679_v19, %s1357_s26 }
  0x93   : > { %v456_v24 = vpop.permute.xlu1 %455  ;;  %v442_v25 = vpop.permute.xlu0 %441 }
  0x94   : > { %v449_v27 = vrot.slane %v442_v25, %v406_v23  ;;  %v463_v28 = vrot.slane %v456_v24, %v406_v23 }
  0x96   : > { %v451_v29 = vmul.f32 %v449_v27, %v437_v26 }
  0x97   : > { %v485_v30 = vpop.permute.xlu1 %484  ;;  %v400_v31 = vpop.permute.xlu0 %399 }
  0x98   : > { %v465_v32 = vadd.f32 %v463_v28, %v451_v29  ;;  %v492_v34 = vrot.slane %v485_v30, %v406_v23  ;;  %v407_v35 = vrot.slane %v400_v31, %v406_v23 }
  0x9a   : > { %v466_v37 = vmax.f32 %v465_v32, 0.0  ;;  %v494_v38 = vmul.f32 %v492_v34, %v480_v33  ;;  %v409_v42 = vmul.f32 %v407_v35, %v395_v36 }
  0x9b   : > { %v499_v39 = vpop.permute.xlu1 %498  ;;  %v414_v40 = vpop.permute.xlu0 %413 }
  0x9c   : > { %v468_v41 = vcombine.high %v466_v37, %v466_v37  ;;  %v506_v43 = vrot.slane %v499_v39, %v406_v23  ;;  %v421_v44 = vrot.slane %v414_v40, %v406_v23 }
  0x9e   : > { %v1187_v45 = vpack.c.bf16 %v468_v41, %v466_v37  ;;  %v508_v46 = vadd.f32 %v506_v43, %v494_v38  ;;  %v423_v47 = vadd.f32 %v421_v44, %v409_v42 }
  0x9f   : > { %v1526_v61 = vpop.permute.xlu1 %713  ;;  %v1528_v62 = vpop.permute.xlu0 %711 }
  0xa0   : > { %v477_v48 = vrot.slane %v1187_v45, 6  ;;  %v509_v49 = vmax.f32 %v508_v46, 0.0  ;;  %v424_v50 = vmax.f32 %v423_v47, 0.0  ;;  %v720_v63 = vmul.f32 %v1528_v62, %v697_v60 }
  0xa1   : > { %v716_v35 = vsel %vm715_vm2, %v1528_v62, %v1526_v61 }
  0xa2   : > { %479 = vst [vmem:[#allocation2] sm:$0xcc] %v477_v48  ;;  %v511_v51 = vcombine.high %v509_v49, %v509_v49  ;;  %v426_v52 = vcombine.high %v424_v50, %v424_v50  ;;  %726 = vrot.lane.b32.xlu1 %v720_v63, %s1363_s24 }
  0xa3   : > { %v1533_v0 = vpop.permute.xlu1 %746  ;;  %v1544_v9 = vpop.permute.xlu0 %744 }
  0xa4   : > { %v1188_v53 = vpack.c.bf16 %v511_v51, %v509_v49  ;;  %v1186_v54 = vpack.c.bf16 %v426_v52, %v424_v50  ;;  %v748_v49 = vsel %vm688_vm4, %v1544_v9, %v1533_v0 }
  0xa6   : > { %521 = vst [vmem:[#allocation2 + $0x8] sm:$0x33] %v1188_v53  ;;  %436 = vst [vmem:[#allocation2] sm:$0x33] %v1186_v54 }
  0xa7   : > { %v1538_v4 = vpop.permute.xlu1 %796  ;;  %v795_v26 = vpop.permute.xlu0 %794 }
  0xa8   : > { %v805_v5 = vmul.f32 %v1538_v4, %v793_v3  ;;  %v799_v41 = vsel %vm798_vm3, %v795_v26, %v1538_v4  ;;  %v886_v3 = vld [vmem:[#allocation3 + $0x98] sm:$0xf] }
  0xaa   : > { %v811_v6 = vrot.slane %v805_v5, 4 }
  0xab   : > { %v1542_v8 = vpop.permute.xlu1 %832  ;;  %v831_v42 = vpop.permute.xlu0 %830 }
  0xac   : > { %816 = vrot.lane.b32.xlu1 %v811_v6, %s1364_s28  ;;  %v841_v11 = vmul.f32 %v1542_v8, %v829_v7  ;;  %v835_v50 = vsel %vm834_vm5, %v831_v42, %v1542_v8 }
  0xad   : > { %v1252_v55 = vld [vmem:[#allocation2 + $0x4] ss:$8 sps:$4 sm:$0x3f]   ;;  %v1254_v56 = vld [vmem:[#allocation2] ss:$8 sps:$4 sm:$0x3f]  }
  0xae   : > { %1171 = vmatprep.subr.msk.bf16.mxu0 %vm560_vm0, %v1252_v55  ;;  %1189 = vmatprep.subr.msk.bf16.mxu1 %vm560_vm0, %v1252_v55  ;;  %v562_v57 = vsel %vm560_vm0, %v1254_v56, 0 }
  0xaf   : > { %568 = vmatpush1.bf16.msra.mxu0 %v562_v57  ;;  %1190 = vmatpush1.bf16.msra.mxu1 %v562_v57  ;;  %v888_v63 = vpop.permute.xlu0 %887  ;;  %v890_v4 = vpop.permute.xlu1 %889 }
  0xb0   : > { %849 = vrot.lane.b32.xlu0 %v841_v11, %s1365_s16  ;;  %v892_v5 = vsel %vm891_vm6, %v888_v63, %v890_v4 }
  0xb2   : > { %1172 = vmatmul.mubr.msk.bf16.vlgmr.msra.gmra.mrb[0].mxu0 %vm550_vm1, %v1255_v58  ;;  %1173 = vmatmul.mubr.msk.bf16.vlgmr.msra.gmra.mrb[0].mxu1 %vm550_vm1, %v1256_v59  ;;  %v862_v59 = vld [vmem:[#allocation3 + $0x78] sm:$0xf0] }
  0xb3   : > { %619 = vmatprep.mubr.bf16.mxu1 %v1354_v2  ;;  %v741_v2 = vld [vmem:[#allocation3 + $0x20] sm:$0xf0]  ;;  %v662_v8 = vpop.permute.xlu0 %661 }
  0xb4   : > { %v752_v10 = vmul.f32 %v1544_v9, %v741_v2  ;;  %v898_v2 = vmul.f32 %v890_v4, %v886_v3 }
  0xb6   : > { %v758_v12 = vrot.slane %v752_v10, 4  ;;  %v664_v10 = vpop.permute.xlu1 %663 }
  0xb7   : > { %v683_v9 = vpop.permute.xlu0 %682 }
  0xb8   : > { %761 = vrot.lane.b32.xlu0 %v758_v12, %s1366_s29 }
  0xba   : > { %1174 = vmatmul.mubr.msk.bf16.gmra.mrb[4].mxu1 %vm550_vm1, %v1257_v1 }
 0x114   : > { %v727_v12 = vpop.permute.xlu1 %726 }
 0x122   : > { %v850_v11 = vpop.permute.xlu0 %849 }
 0x185   : > { %v601_v13 = vpop.f32.mrb[0].mxu0  ;;  %v611_v14 = vpop.f32.mrb[0].mxu1 }
 0x186   : > { %638 = vst [vmem:[#allocation3 + $0x8] sm:$0xff] %v601_v13  ;;  %642 = vst [vmem:[#allocation3 + $0x48] sm:$0xff] %v611_v14  ;;  %v603_v15 = vpop.f32.mrb[1].mxu0  ;;  %v613_v16 = vpop.f32.mrb[1].mxu1 }
 0x187   : > { %639 = vst [vmem:[#allocation3 + $0x10] sm:$0xff] %v603_v15  ;;  %643 = vst [vmem:[#allocation3 + $0x50] sm:$0xff] %v613_v16  ;;  %v605_v17 = vpop.f32.mrb[2].mxu0  ;;  %v615_v18 = vpop.f32.mrb[2].mxu1 }
 0x188   : > { %640 = vst [vmem:[#allocation3 + $0x28] sm:$0xff] %v605_v17  ;;  %644 = vst [vmem:[#allocation3 + $0x68] sm:$0xff] %v615_v18  ;;  %v607_v19 = vpop.f32.mrb[3].mxu0  ;;  %v617_v20 = vpop.f32.mrb[3].mxu1 }
 0x189   : > { %641 = vst [vmem:[#allocation3 + $0x30] sm:$0xff] %v607_v19  ;;  %645 = vst [vmem:[#allocation3 + $0x70] sm:$0xff] %v617_v20  ;;  %v762_v13 = vpop.permute.xlu0 %761  ;;  %v817_v14 = vpop.permute.xlu1 %816 }
 0x18d   : > { %v776_v21 = vld [vmem:[#allocation3 + $0x48] sm:$0xf]  ;;  %v674_v22 = vld [vmem:[#allocation3 + $0x8] sm:$0xf0]  ;;  %v621_v25 = vpop.f32.mrb[4].mxu1 }
 0x18e   : > { %780 = vrot.lane.b32.xlu1 %v776_v21, %s1361_s14  ;;  %v777_v23 = vld [vmem:[#allocation3 + $0x50] sm:$0xf]  ;;  %v680_v24 = vrot.slane %v674_v22, 4  ;;  %v675_v27 = vld [vmem:[#allocation3 + $0x10] sm:$0xf0]  ;;  %v623_v31 = vpop.f32.mrb[5].mxu1 }
 0x18f   : > { %782 = vrot.lane.b32.xlu0 %v777_v23, %s1361_s14  ;;  %v791_v28 = vld [vmem:[#allocation3 + $0x48] sm:$0xf0]  ;;  %646 = vst [vmem:[#allocation3 + $0x88] sm:$0xf] %v621_v25  ;;  %v681_v29 = vrot.slane %v675_v27, 4  ;;  %v625_v32 = vpop.f32.mrb[6].mxu1 }
 0x190   : > { %v803_v30 = vmul.f32 %v795_v26, %v791_v28  ;;  %647 = vst [vmem:[#allocation3 + $0x90] sm:$0xf] %v623_v31  ;;  %v698_v33 = vld [vmem:[#allocation3 + $0x28] sm:$0xf]  ;;  %v626_v34 = vpop.f32.mrb[7].mxu1  ;;  %s1368_s14 = smov 94   ;;  %v666_v26 = vsel %vm665_vm7, %v662_v8, %v664_v10 }
 0x191   : > { %v721_v37 = vmul.f32 %v716_v35, %v698_v33  ;;  %v699_v38 = vld [vmem:[#allocation3 + $0x30] sm:$0xf]  ;;  %v827_v39 = vld [vmem:[#allocation3 + $0x68] sm:$0xf]  ;;  %v792_v40 = vld [vmem:[#allocation3 + $0x50] sm:$0xf0] }
 0x192   : > { %684 = vrot.lane.b32.xlu1 %v680_v24, %s1357_s26  ;;  %v809_v36 = vrot.slane %v803_v30, 4  ;;  %v722_v43 = vmul.f32 %v1526_v61, %v699_v38  ;;  %v839_v44 = vmul.f32 %v831_v42, %v827_v39  ;;  %v828_v45 = vld [vmem:[#allocation3 + $0x70] sm:$0xf]  ;;  %v804_v46 = vmul.f32 %v799_v41, %v792_v40  ;;  %v742_v47 = vld [vmem:[#allocation3 + $0x28] sm:$0xf0] }
 0x193   : > { %686 = vrot.lane.b32.xlu0 %v681_v29, %s1357_s26  ;;  %v743_v48 = vld [vmem:[#allocation3 + $0x30] sm:$0xf0]  ;;  %v840_v51 = vmul.f32 %v835_v50, %v828_v45  ;;  %v753_v52 = vmul.f32 %v748_v49, %v742_v47  ;;  %v860_v57 = vld [vmem:[#allocation3 + $0x68] sm:$0xf0]  ;;  %s1367_s26 = smov 95  }
 0x194   : > { %v810_v53 = vrot.slane %v804_v46, 4  ;;  %v754_v54 = vmul.f32 %v1533_v0, %v743_v48  ;;  %v861_v58 = vld [vmem:[#allocation3 + $0x70] sm:$0xf0]  ;;  %v866_v60 = vrot.slane %v860_v57, 4  ;;  %v868_v0 = vrot.slane %v862_v59, 4 }
 0x195   : > { %v759_v55 = vrot.slane %v753_v52, 4  ;;  %v867_v62 = vrot.slane %v861_v58, 4  ;;  %v650_v22 = vld [vmem:[#allocation3 + $0x10] sm:$0xf]  ;;  %v648_v23 = vld [vmem:[#allocation3] sm:$0xf] }
 0x196   : > { %812 = vrot.lane.b32.xlu1 %v809_v36, %s1364_s28  ;;  %v760_v56 = vrot.slane %v754_v54, 4  ;;  %v884_v61 = vld [vmem:[#allocation3 + $0x88] sm:$0xf]  ;;  %v672_v28 = vmul.f32 %v664_v10, %v650_v22  ;;  %v670_v29 = vmul.f32 %v662_v8, %v648_v23 }
 0x197   : > { %728 = vrot.lane.b32.xlu0 %v721_v37, %s1363_s24  ;;  %v896_v1 = vmul.f32 %v888_v63, %v884_v61  ;;  %v885_v6 = vld [vmem:[#allocation3 + $0x90] sm:$0xf]  ;;  %v649_v25 = vld [vmem:[#allocation3 + $0x8] sm:$0xf] }
 0x198   : > { %v897_v7 = vmul.f32 %v892_v5, %v885_v6  ;;  %v671_v32 = vmul.f32 %v666_v26, %v649_v25 }
 0x19a   : > { %730 = vrot.lane.b32.xlu1 %v722_v43, %s1363_s24  ;;  %s1705_s24 = sshll.u32 %s1442_s13, 6 }
 0x19b   : > { %845 = vrot.lane.b32.xlu0 %v839_v44, %s1365_s16 }
 0x19e   : > { %847 = vrot.lane.b32.xlu1 %v840_v51, %s1365_s16 }
 0x19f   : > { %814 = vrot.lane.b32.xlu0 %v810_v53, %s1364_s28  ;;  %s1369_s28 = smov [#allocation4]  }
 0x1a0   : > { %s1262_s16 = sshll.u32 %s1369_s28, 4  ;;  %s1263_s16 = int_to_ptr.vmem [resolvable:$false] %s1262_s16 }
 0x1a1   : > { %p1265_p0 = scmp.lt.s32.totalorder %s1606_s27, %s1263_s16 }
 0x1a2   : > { %763 = vrot.lane.b32.xlu1 %v759_v55, %s1366_s29 }
 0x1a3   : > { %765 = vrot.lane.b32.xlu0 %v760_v56, %s1366_s29  ;;  %s1604_s29 = scalar_lea.hbm %s1701_s8, %s1705_s24  ;;  %s1264_s24 = scalar_lea.vmem %s1263_s16, 128 }
 0x1a4   : > { %p1266_p1 = scmp.lt.s32.totalorder %s1264_s24, %s1258_s0 }
 0x1a6   : > { %869 = vrot.lane.b32.xlu1 %v866_v60, %s1367_s26  ;;  %p1267_p2 = por %p1266_p1, %p1265_p0 }
 0x1a7   : > { %871 = vrot.lane.b32.xlu0 %v867_v62, %s1367_s26 }
 0x1a8   : > { %p1268_p3 = pnand %p1267_p2, %p1261_p13 }
 0x1aa   : > { %873 = vrot.lane.b32.xlu1 %v868_v0, %s1367_s26  ;;  %s1608_s26 = scalar_lea.vmem [#allocation6], %s1153_s23 }
 0x1ab   : > { %902 = vrot.lane.b32.xlu0 %v896_v1, %s1368_s14 }
 0x1ae   : > { %904 = vrot.lane.b32.xlu1 %v897_v7, %s1368_s14 }
 0x1af   : > { %906 = vrot.lane.b32.xlu0 %v898_v2, %s1368_s14 }
 0x200   : > { %v781_v15 = vpop.permute.xlu1 %780 }
 0x201   : > { %v783_v16 = vpop.permute.xlu0 %782 }
 0x202   : > { %v784_v49 = vsel %vm665_vm7, %v781_v15, %v783_v16 }
 0x204   : > { %v685_v17 = vpop.permute.xlu1 %684 }
 0x205   : > { %v687_v18 = vpop.permute.xlu0 %686  ;;  %v689_v27 = vsel %vm688_vm4, %v683_v9, %v685_v17 }
 0x206   : > { %v690_v30 = vsel %vm688_vm4, %v685_v17, %v687_v18  ;;  %v694_v35 = vadd.f32 %v689_v27, %v670_v29  ;;  %v696_v36 = vadd.f32 %v687_v18, %v672_v28 }
 0x207   : > { %v695_v38 = vadd.f32 %v690_v30, %v671_v32 }
 0x208   : > { %v813_v19 = vpop.permute.xlu1 %812 }
 0x209   : > { %v729_v20 = vpop.permute.xlu0 %728 }
 0x20a   : > { %v733_v33 = vsel %vm732_vm8, %v727_v12, %v729_v20 }
 0x20b   : > { %v738_v39 = vadd.f32 %v733_v33, %v694_v35 }
 0x20c   : > { %v731_v21 = vpop.permute.xlu1 %730 }
 0x20d   : > { %v846_v24 = vpop.permute.xlu0 %845  ;;  %v734_v37 = vsel %vm732_vm8, %v729_v20, %v731_v21  ;;  %v740_v40 = vadd.f32 %v731_v21, %v696_v36 }
 0x20e   : > { %v739_v42 = vadd.f32 %v734_v37, %v695_v38 }
 0x210   : > { %v848_v31 = vpop.permute.xlu1 %847 }
 0x211   : > { %v815_v34 = vpop.permute.xlu0 %814  ;;  %v852_v60 = vsel %vm851_vm11, %v846_v24, %v848_v31  ;;  %v853_v61 = vsel %vm851_vm11, %v848_v31, %v850_v11 }
 0x212   : > { %v820_v53 = vsel %vm818_vm10, %v815_v34, %v817_v14  ;;  %v819_v56 = vsel %vm818_vm10, %v813_v19, %v815_v34 }
 0x214   : > { %v764_v41 = vpop.permute.xlu1 %763 }
 0x215   : > { %v768_v43 = vsel %vm767_vm9, %v762_v13, %v764_v41  ;;  %v766_v44 = vpop.permute.xlu0 %765 }
 0x216   : > { %v773_v45 = vadd.f32 %v768_v43, %v738_v39  ;;  %v769_v46 = vsel %vm767_vm9, %v764_v41, %v766_v44  ;;  %v775_v47 = vadd.f32 %v766_v44, %v740_v40 }
 0x217   : > { %v774_v48 = vadd.f32 %v769_v46, %v739_v42 }
 0x218   : > { %v788_v50 = vadd.f32 %v781_v15, %v773_v45  ;;  %v790_v51 = vadd.f32 %v783_v16, %v775_v47  ;;  %v870_v52 = vpop.permute.xlu1 %869 }
 0x219   : > { %v789_v54 = vadd.f32 %v784_v49, %v774_v48  ;;  %v872_v55 = vpop.permute.xlu0 %871 }
 0x21a   : > { %v826_v57 = vadd.f32 %v820_v53, %v790_v51  ;;  %v824_v58 = vadd.f32 %v813_v19, %v788_v50  ;;  %v876_v5 = vsel %vm875_vm12, %v870_v52, %v872_v55 }
 0x21b   : > { %v825_v59 = vadd.f32 %v819_v56, %v789_v54 }
 0x21c   : > { %v857_v62 = vadd.f32 %v846_v24, %v824_v58  ;;  %v874_v63 = vpop.permute.xlu1 %873  ;;  %v859_v1 = vadd.f32 %v853_v61, %v826_v57 }
 0x21d   : > { %v858_v0 = vadd.f32 %v852_v60, %v825_v59  ;;  %v903_v3 = vpop.permute.xlu0 %902  ;;  %v877_v6 = vsel %vm875_vm12, %v872_v55, %v874_v63 }
 0x21e   : > { %v881_v4 = vadd.f32 %v870_v52, %v857_v62  ;;  %v883_v9 = vadd.f32 %v877_v6, %v859_v1 }
 0x21f   : > { %v882_v2 = vadd.f32 %v876_v5, %v858_v0 }
 0x220   : > { %v914_v7 = vadd.f32 %v903_v3, %v881_v4  ;;  %v905_v8 = vpop.permute.xlu1 %904 }
 0x221   : > { %v909_v10 = vsel %vm908_vm13, %v903_v3, %v905_v8  ;;  %v907_v12 = vpop.permute.xlu0 %906 }
 0x222   : > { %v915_v13 = vadd.f32 %v909_v10, %v882_v2  ;;  %v910_v14 = vsel %vm908_vm13, %v905_v8, %v907_v12  ;;  %932 = vrot.lane.b32.xlu0 %v914_v7, %s1712_s21  ;;  %v947_v15 = vmul.f32 %v914_v7, %v914_v7 }
 0x223   : > { %v916_v11 = vadd.f32 %v910_v14, %v883_v9 }
 0x224   : > { %v920_v16 = vcombine.low %v914_v7, %v915_v13  ;;  %v948_v18 = vmul.f32 %v915_v13, %v915_v13 }
 0x225   : > { %923 = vrot.lane.b32.xlu1 %v916_v11, %s1712_s21  ;;  %v949_v17 = vmul.f32 %v916_v11, %v916_v11 }
 0x226   : > { %953 = vrot.lane.b32.xlu0 %v947_v15, %s1712_s21 }
 0x229   : > { %934 = vrot.lane.b32.xlu1 %v915_v13, %s1712_s21 }
 0x22a   : > { %957 = vrot.lane.b32.xlu0 %v949_v17, %s1712_s21 }
 0x22d   : > { %955 = vrot.lane.b32.xlu1 %v948_v18, %s1712_s21 }
 0x294   : > { %v933_v19 = vpop.permute.xlu0 %932 }
 0x297   : > { %v1582_v20 = vpop.permute.xlu1 %923 }
 0x298   : > { %v954_v21 = vpop.permute.xlu0 %953 }
 0x29b   : > { %v935_v22 = vpop.permute.xlu1 %934 }
 0x29c   : > { %v936_v23 = vsel %vm891_vm6, %v933_v19, %v935_v22  ;;  %v937_v24 = vsel %vm891_vm6, %v935_v22, %v1582_v20  ;;  %v958_v28 = vpop.permute.xlu0 %957 }
 0x29d   : > { %v940_v25 = vsel %vm927_vm14, %v936_v23, 0.0  ;;  %v941_v26 = vsel %vm927_vm14, %v937_v24, 0.0 }
 0x29e   : > { %v942_v27 = vadd.f32 %v941_v26, %v940_v25 }
 0x29f   : > { %v956_v29 = vpop.permute.xlu1 %955 }
 0x2a0   : > { %v959_v30 = vsel %vm891_vm6, %v954_v21, %v956_v29  ;;  %v960_v31 = vsel %vm891_vm6, %v956_v29, %v958_v28  ;;  %943 = vadd.xlane.f32.xlu1 %v942_v27 }
 0x2a1   : > { %v963_v32 = vsel %vm927_vm14, %v959_v30, 0.0  ;;  %v964_v33 = vsel %vm927_vm14, %v960_v31, 0.0 }
 0x2a2   : > { %v965_v34 = vadd.f32 %v964_v33, %v963_v32 }
 0x2a4   : > { %966 = vadd.xlane.f32.xlu0 %v965_v34 }
 0x2ba   : > { %921 = vrot.lane.b32.xlu0 %v920_v16, %s1712_s21  ;;  %s975_s21 = scalar_lea.sflag [#allocation5], %s1595_s22 }
 0x32d   : > { %v944_v35 = vpop.xlane.xlu1 %943 }
 0x32e   : > { %946 = vst.msk [vmem:[%s366_s25] sm:$0xf] %vm945_vm15, %v944_v35 }
 0x32f   : > { %1271 = shalt.err (!%p1268_p3)
}
 0x330   : > { %s1272_s23 = scalar_lea.hbm %s1604_s29, 64  ;;  %s1276_s28 = scalar_lea.hbm %s1701_s8, 128 }
 0x331   : > { %p1273_p4 = scmp.ne.s32.totalorder %s1604_s29, %s1272_s23  ;;  %p1277_p9 = scmp.lt.u32.totalorder %s1604_s29, %s1701_s8 }
 0x332   : > { %p1278_p10 = scmp.lt.u32.totalorder %s1276_s28, %s1272_s23  ;;  %p1280_p12 = scmp.lt.u32.totalorder %s1272_s23, %s1604_s29 }
 0x333   : > { %p1274_p7 = pnand %p1273_p4, %p1459_p5 }
 0x334   : > { %p1279_p11 = por %p1278_p10, %p1277_p9 }
 0x335   : > { %p1275_p8 = pneg %p1274_p7 }
 0x336   : > { %p1281_p13 = por %p1280_p12, %p1279_p11 }
 0x338   : > { %p1282_p0 = pnand %p1281_p13, %p1275_p8 }
 0x33a   : > { %1285 = shalt.err (!%p1282_p0)
}
 0x33b   : > { %1191 = dma.vmem_to_hbm [thread:$0]  (%p1459_p5), %s1606_s27, 64, %s1604_s29, %s975_s21   ;;  %v967_v36 = vpop.xlane.xlu0 %966 }
 0x33c   : > { %s1713_s0 = sshll.u32 %s1442_s13, 6  ;;  %s1714_s23 = sshll.u32 %s1608_s26, 4  ;;  %968 = vst.msk [vmem:[%s1608_s26] sm:$0xf] %vm945_vm15, %v967_v36  ;;  %s1643_s23 = int_to_ptr.vmem [resolvable:$true] %s1714_s23 }
 0x33d   : > { %s1639_s14 = scalar_lea.hbm %s1702_s9, %s1713_s0  ;;  %s980_s25 = scalar_lea.sflag [#allocation7], %s1595_s22 }
 0x33e   : > { %s1286_s28 = scalar_lea.vmem %s1643_s23, 64  ;;  %s1370_s13 = smov [#allocation6]  }
 0x33f   : > { %p1287_p1 = scmp.ne.s32.totalorder %s1643_s23, %s1286_s28  ;;  %s1290_s27 = sshll.u32 %s1370_s13, 4  ;;  %s1291_s27 = int_to_ptr.vmem [resolvable:$false] %s1290_s27 }
 0x340   : > { %s1292_s29 = scalar_lea.vmem %s1291_s27, 128  ;;  %p1293_p4 = scmp.lt.s32.totalorder %s1643_s23, %s1291_s27 }
 0x341   : > { %p1288_p2 = pnand %p1287_p1, %p1459_p5  ;;  %p1294_p7 = scmp.lt.s32.totalorder %s1292_s29, %s1286_s28 }
 0x343   : > { %p1289_p3 = pneg %p1288_p2  ;;  %p1295_p8 = por %p1294_p7, %p1293_p4 }
 0x345   : > { %p1296_p9 = pnand %p1295_p8, %p1289_p3 }
 0x347   : > { %1299 = shalt.err (!%p1296_p9)
}
 0x348   : > { %s1300_s22 = scalar_lea.hbm %s1639_s14, 64  ;;  %s1304_s16 = scalar_lea.hbm %s1702_s9, 128 }
 0x349   : > { %p1301_p10 = scmp.ne.s32.totalorder %s1639_s14, %s1300_s22  ;;  %p1305_p13 = scmp.lt.u32.totalorder %s1639_s14, %s1702_s9 }
 0x34a   : > { %p1306_p0 = scmp.lt.u32.totalorder %s1304_s16, %s1300_s22  ;;  %p1308_p2 = scmp.lt.u32.totalorder %s1300_s22, %s1639_s14 }
 0x34b   : > { %p1302_p11 = pnand %p1301_p10, %p1459_p5 }
 0x34c   : > { %p1307_p1 = por %p1306_p0, %p1305_p13 }
 0x34d   : > { %p1303_p12 = pneg %p1302_p11 }
 0x34e   : > { %p1309_p3 = por %p1308_p2, %p1307_p1 }
 0x350   : > { %p1310_p4 = pnand %p1309_p3, %p1303_p12 }
 0x352   : > { %1313 = shalt.err (!%p1310_p4)
}
 0x353   : > { %1192 = dma.vmem_to_hbm [thread:$0]  (%p1459_p5), %s1643_s23, 64, %s1639_s14, %s980_s25   ;;  %v922_v37 = vpop.permute.xlu0 %921  ;;  %v926_v38 = vrot.slane %v1582_v20, 4 }
 0x354   : > { %v925_v39 = vrot.slane %v922_v37, 4  ;;  %s393_s13 = scalar_lea.vmem %s1700_s7, %s1506_s17 }
 0x356   : > { %v928_v40 = vsel %vm927_vm14, %v925_v39, %v926_v38 }
 0x357   : > { %v929_v41 = vsel %vm891_vm6, %v922_v37, %v928_v40 }
 0x358   : > { %931 = vst [vmem:[%s393_s13] sm:$0xff] %v929_v41 }
 0x359 PF: > { %p1202_p7 = scmp.ge.s32.totalorder %s1352_s12, 2  ;;  %s1029_s19 = sand.u32 1, %s1340_s30  }
 0x35a   : > { %s1030_s14 = scalar_lea.sflag [#allocation5], %s1029_s19 }
 0x35b   : > { %p1196_p5 = pnand %p1202_p7, %p1463_p6 }
 0x35d   : > { %1331 = dma.done.wait (!%p1196_p5), %s1030_s14, 64  }
 0x35e   : > { %1333 = vsyncadd (!%p1196_p5), %s1030_s14, 4294967232  ;;  %s1039_s23 = scalar_lea.sflag [#allocation7], %s1029_s19 }
 0x35f   : > { %1335 = dma.done.wait (!%p1196_p5), %s1039_s23, 64  }
 0x360   : > { %1337 = vsyncadd (!%p1196_p5), %s1039_s23, 4294967232  ;;  %p23_p8 = scmp.ge.s32.totalorder %s1446_s15, 4   ;;  %s1715_s30 = smov %s1344_s10 }
 0x361   : > { %s1716_s10 = smov %s1348_s11  ;;  %s1717_s11 = smov %s1457_s18 }
 0x362   : > { %s1718_s12 = smov %s1446_s15  ;;  %25 = sbr.rel (!%p23_p8) target bundleno = 8 (0x8), region = 119 }
 0x369   :  { %1044 = vsyncpa [#allocation5], 1 }
 0x36a   :  { %1046 = vsyncpa [#allocation5 + $0x1], 1 }
 0x36b   :  { %1047 = vsyncpa [#allocation7], 1 }
 0x36c   :  { %1049 = vsyncpa [#allocation7 + $0x1], 1 }

</bundles_post_ra>
